<compile_context>
chip_gen: v7x
topology: tpu7x:2x2x1
jax: 0.10.0
libtpu: 0.0.40
codegen_flags: <defaults>
</compile_context>

<pallas_src>
import jax
import jax.numpy as jnp
from jax.experimental import pallas as pl
from jax.experimental.pallas import tpu as pltpu

# ---- small, deterministic problem sizes -------------------------------------
TQ, SE, B, E, H, F = 8, 16, 2, 32, 4, 64      # tgt_len, src_len, batch, embed, heads, ffn
HD = E // H
SCALE = HD ** -0.5
EPS = 1e-5                                    # torch.nn.LayerNorm default eps
NEG = jnp.float32(-1e9)                       # additive mask value (NaN-safe)

# rows of the packed vector bank (biases + LayerNorm params), lane width 128
(ROW_B_QKV, ROW_B_OS, ROW_B_QX, ROW_B_KVE, ROW_B_OX, ROW_B_FC1, ROW_B_FC2,
 ROW_LN1_G, ROW_LN1_B, ROW_LN2_G, ROW_LN2_B, ROW_LN3_G, ROW_LN3_B) = range(13)
VROWS, VW = 16, 128


# ================================ kernel ======================================

def _decoder_layer_kernel(x_ref, enc_ref, am_ref, skpm_ref, ekpm_ref,
                          wqkv_ref, wos_ref, wqx_ref, wkve_ref, wox_ref,
                          w1_ref, w2_ref, vec_ref, out_ref, ctx_ref):
    f32 = jnp.float32
    x = x_ref[0]                      # (TQ, E)
    enc = enc_ref[0]                  # (SE, E)

    def vec(row, n):                  # (1, n) slice of the packed vector bank
        return vec_ref[row:row + 1, 0:n]

    def layer_norm(z, g_row, b_row):
        g = vec(g_row, E)
        b = vec(b_row, E)
        mu = jnp.mean(z, axis=-1, keepdims=True)
        var = jnp.mean((z - mu) ** 2, axis=-1, keepdims=True)
        return (z - mu) * jax.lax.rsqrt(var + EPS) * g + b

    def attend(q, k, v, bias, w_o, b_o):
        # per-head softmax(Q K^T + bias) V written into ctx scratch, then a
        # single (TQ,E)x(E,E) output-projection dot.
        for h in range(H):
            sl = slice(h * HD, (h + 1) * HD)
            s = jax.lax.dot_general(q[:, sl], k[:, sl],
                                    (((1,), (1,)), ((), ())),
                                    preferred_element_type=f32) + bias
            m = jnp.max(s, axis=-1, keepdims=True)
            e = jnp.exp(s - m)
            p = e * pl.reciprocal(jnp.sum(e, axis=-1, keepdims=True), approx=True)
            ctx_ref[:, sl] = jnp.dot(p, v[:, sl], preferred_element_type=f32)
        return jnp.dot(ctx_ref[...], w_o, preferred_element_type=f32) + b_o

    # ---- self attention (fused QKV) + residual + LayerNorm ----
    qkv = jnp.dot(x, wqkv_ref[...], preferred_element_type=f32) + vec(ROW_B_QKV, 3 * E)
    q = qkv[:, 0:E] * SCALE
    k = qkv[:, E:2 * E]
    v = qkv[:, 2 * E:3 * E]
    self_bias = am_ref[...] + skpm_ref[0]           # (TQ,TQ) + (1,TQ) -> (TQ,TQ)
    attn = attend(q, k, v, self_bias, wos_ref[...], vec(ROW_B_OS, E))
    x1 = layer_norm(x + attn, ROW_LN1_G, ROW_LN1_B)

    # ---- encoder-decoder (cross) attention (fused KV) + residual + LayerNorm ----
    qx = (jnp.dot(x1, wqx_ref[...], preferred_element_type=f32) + vec(ROW_B_QX, E)) * SCALE
    kv = jnp.dot(enc, wkve_ref[...], preferred_element_type=f32) + vec(ROW_B_KVE, 2 * E)
    attn2 = attend(qx, kv[:, 0:E], kv[:, E:2 * E], ekpm_ref[0],
                   wox_ref[...], vec(ROW_B_OX, E))
    x2 = layer_norm(x1 + attn2, ROW_LN2_G, ROW_LN2_B)

    # ---- FFN + residual + LayerNorm ----
    hdn = jnp.maximum(
        jnp.dot(x2, w1_ref[...], preferred_element_type=f32) + vec(ROW_B_FC1, F), 0.0)
    y = jnp.dot(hdn, w2_ref[...], preferred_element_type=f32) + vec(ROW_B_FC2, E)
    out_ref[0] = layer_norm(x2 + y, ROW_LN3_G, ROW_LN3_B)


# ============================ pallas wrapper ==================================

def transformer_decoder_layer(x_sbe, enc_sbe, self_attn_mask,
                              self_attn_padding_mask, encoder_padding_mask, kp):
    """x_sbe: (TQ,B,E); enc_sbe: (SE,B,E); self_attn_mask: (TQ,TQ) bool (True=exclude);
    self_attn_padding_mask: (B,TQ) bool (True=pad); encoder_padding_mask: (B,SE) bool."""
    x_bse = jnp.transpose(x_sbe, (1, 0, 2))             # (B,TQ,E)
    enc_bse = jnp.transpose(enc_sbe, (1, 0, 2))         # (B,SE,E)
    am_bias = jnp.where(self_attn_mask, NEG, jnp.float32(0.0))
    skpm_bias = jnp.where(self_attn_padding_mask, NEG, jnp.float32(0.0))[:, None, :]
    ekpm_bias = jnp.where(encoder_padding_mask, NEG, jnp.float32(0.0))[:, None, :]

    def bcast(shape):
        return pl.BlockSpec(shape, lambda b: (0,) * len(shape))

    out_bse = pl.pallas_call(
        _decoder_layer_kernel,
        out_shape=jax.ShapeDtypeStruct((B, TQ, E), jnp.float32),
        grid=(B,),
        in_specs=[
            pl.BlockSpec((1, TQ, E), lambda b: (b, 0, 0)),   # x
            pl.BlockSpec((1, SE, E), lambda b: (b, 0, 0)),   # encoder_out
            bcast((TQ, TQ)),                                 # attn_mask bias
            pl.BlockSpec((1, 1, TQ), lambda b: (b, 0, 0)),   # self key-padding bias
            pl.BlockSpec((1, 1, SE), lambda b: (b, 0, 0)),   # enc key-padding bias
            bcast((E, 3 * E)),                               # fused QKV weight
            bcast((E, E)),                                   # self out-proj
            bcast((E, E)),                                   # cross q-proj
            bcast((E, 2 * E)),                               # fused cross KV weight
            bcast((E, E)),                                   # cross out-proj
            bcast((E, F)),                                   # fc1
            bcast((F, E)),                                   # fc2
            bcast((VROWS, VW)),                              # packed biases / LN params
        ],
        out_specs=pl.BlockSpec((1, TQ, E), lambda b: (b, 0, 0)),
        scratch_shapes=[pltpu.VMEM((TQ, E), jnp.float32)],
        compiler_params=pltpu.CompilerParams(
            dimension_semantics=("parallel",)),
    )(x_bse, enc_bse, am_bias, skpm_bias, ekpm_bias,
      kp["w_qkv"], kp["w_o_self"], kp["w_q_x"], kp["w_kv_enc"], kp["w_o_x"],
      kp["w1"], kp["w2"], kp["vec_bank"])
    return jnp.transpose(out_bse, (1, 0, 2))


# ================================ params ======================================

def init_raw_params(key):
    ks = jax.random.split(key, 32)
    it = iter(ks)

    def lin(din, dout):
        w = 0.05 * jax.random.normal(next(it), (dout, din), jnp.float32)  # torch (out,in)
        b = 0.05 * jax.random.normal(next(it), (dout,), jnp.float32)
        return w, b

    def ln_params():
        g = 1.0 + 0.1 * jax.random.normal(next(it), (E,), jnp.float32)
        b = 0.1 * jax.random.normal(next(it), (E,), jnp.float32)
        return g, b

    r = {}
    r["wq_s"], r["bq_s"] = lin(E, E)
    r["wk_s"], r["bk_s"] = lin(E, E)
    r["wv_s"], r["bv_s"] = lin(E, E)
    r["wo_s"], r["bo_s"] = lin(E, E)
    r["wq_c"], r["bq_c"] = lin(E, E)
    r["wk_c"], r["bk_c"] = lin(E, E)
    r["wv_c"], r["bv_c"] = lin(E, E)
    r["wo_c"], r["bo_c"] = lin(E, E)
    r["w1"], r["b1"] = lin(E, F)
    r["w2"], r["b2"] = lin(F, E)
    r["ln1_g"], r["ln1_b"] = ln_params()
    r["ln2_g"], r["ln2_b"] = ln_params()
    r["ln3_g"], r["ln3_b"] = ln_params()
    return r


def pack_params(r):
    bank = jnp.zeros((VROWS, VW), jnp.float32)

    def setrow(b, row, v):
        return b.at[row, :v.shape[0]].set(v)

    bank = setrow(bank, ROW_B_QKV, jnp.concatenate([r["bq_s"], r["bk_s"], r["bv_s"]]))
    bank = setrow(bank, ROW_B_OS, r["bo_s"])
    bank = setrow(bank, ROW_B_QX, r["bq_c"])
    bank = setrow(bank, ROW_B_KVE, jnp.concatenate([r["bk_c"], r["bv_c"]]))
    bank = setrow(bank, ROW_B_OX, r["bo_c"])
    bank = setrow(bank, ROW_B_FC1, r["b1"])
    bank = setrow(bank, ROW_B_FC2, r["b2"])
    bank = setrow(bank, ROW_LN1_G, r["ln1_g"])
    bank = setrow(bank, ROW_LN1_B, r["ln1_b"])
    bank = setrow(bank, ROW_LN2_G, r["ln2_g"])
    bank = setrow(bank, ROW_LN2_B, r["ln2_b"])
    bank = setrow(bank, ROW_LN3_G, r["ln3_g"])
    bank = setrow(bank, ROW_LN3_B, r["ln3_b"])
    return {
        "w_qkv": jnp.concatenate([r["wq_s"].T, r["wk_s"].T, r["wv_s"].T], axis=1),  # (E,3E)
        "w_o_self": r["wo_s"].T,
        "w_q_x": r["wq_c"].T,
        "w_kv_enc": jnp.concatenate([r["wk_c"].T, r["wv_c"].T], axis=1),            # (E,2E)
        "w_o_x": r["wo_c"].T,
        "w1": r["w1"].T,
        "w2": r["w2"].T,
        "vec_bank": bank,
    }


# ========================= pure-JAX reference (check) =========================

def reference(x_sbe, enc_sbe, attn_mask, self_kpm, enc_kpm, r):
    am_bias = jnp.where(attn_mask, NEG, jnp.float32(0.0))
    skpm_bias = jnp.where(self_kpm, NEG, jnp.float32(0.0))          # (B,TQ)
    ekpm_bias = jnp.where(enc_kpm, NEG, jnp.float32(0.0))           # (B,SE)

    x = jnp.transpose(x_sbe, (1, 0, 2))                             # (B,TQ,E)
    enc = jnp.transpose(enc_sbe, (1, 0, 2))                         # (B,SE,E)

    def mha(q_in, kv_in, wq, bq, wk, bk, wv, bv, wo, bo, bias):
        q = (q_in @ wq.T + bq) * SCALE
        k = kv_in @ wk.T + bk
        v = kv_in @ wv.T + bv
        Bn, Tn, _ = q.shape
        Sk = k.shape[1]
        qh = q.reshape(Bn, Tn, H, HD).transpose(0, 2, 1, 3)
        kh = k.reshape(Bn, Sk, H, HD).transpose(0, 2, 1, 3)
        vh = v.reshape(Bn, Sk, H, HD).transpose(0, 2, 1, 3)
        s = jnp.einsum("bhqd,bhkd->bhqk", qh, kh) + bias[:, None]
        p = jax.nn.softmax(s, axis=-1)
        o = jnp.einsum("bhqk,bhkd->bhqd", p, vh).transpose(0, 2, 1, 3).reshape(Bn, Tn, E)
        return o @ wo.T + bo

    def ln(z, g, b):
        mu = jnp.mean(z, -1, keepdims=True)
        var = jnp.mean((z - mu) ** 2, -1, keepdims=True)
        return (z - mu) / jnp.sqrt(var + EPS) * g + b

    self_bias = am_bias[None] + skpm_bias[:, None, :]               # (B,TQ,TQ)
    a = mha(x, x, r["wq_s"], r["bq_s"], r["wk_s"], r["bk_s"], r["wv_s"], r["bv_s"],
            r["wo_s"], r["bo_s"], self_bias)
    x1 = ln(x + a, r["ln1_g"], r["ln1_b"])

    cross_bias = ekpm_bias[:, None, :]                              # (B,1,SE)
    a2 = mha(x1, enc, r["wq_c"], r["bq_c"], r["wk_c"], r["bk_c"], r["wv_c"], r["bv_c"],
             r["wo_c"], r["bo_c"], cross_bias)
    x2 = ln(x1 + a2, r["ln2_g"], r["ln2_b"])

    h = jnp.maximum(x2 @ r["w1"].T + r["b1"], 0.0)
    y = h @ r["w2"].T + r["b2"]
    out = ln(x2 + y, r["ln3_g"], r["ln3_b"])
    return jnp.transpose(out, (1, 0, 2))


# ================================ main ========================================

if __name__ == "__main__":
    key = jax.random.PRNGKey(0)
    kx, ke, kp = jax.random.split(key, 3)
    raw = init_raw_params(kp)
    kparams = pack_params(raw)

    x = jax.random.normal(kx, (TQ, B, E), jnp.float32)       # (tgt_len, batch, embed)
    enc = jax.random.normal(ke, (SE, B, E), jnp.float32)     # (src_len, batch, embed)

    ii = jnp.arange(TQ)[:, None]
    jj = jnp.arange(TQ)[None, :]
    self_attn_mask = jj > ii                                  # causal (True = exclude)
    self_kpm = jnp.zeros((B, TQ), dtype=bool).at[1, -2:].set(True)
    enc_kpm = jnp.zeros((B, SE), dtype=bool).at[1, -4:].set(True)

    out = transformer_decoder_layer(x, enc, self_attn_mask, self_kpm, enc_kpm, kparams)
    out = jax.block_until_ready(out)

    ref = reference(x, enc, self_attn_mask, self_kpm, enc_kpm, raw)
    assert out.shape == (TQ, B, E)
    assert jnp.allclose(out, ref, rtol=2e-3, atol=2e-3), "mismatch vs reference"

    print("KERNEL_OK")
</pallas_src>

<mosaic_0001>
module attributes {stable_mosaic.version = 11 : i64} {
  func.func @_decoder_layer_kernel(%arg0: i32, %arg1: memref<1x8x32xf32, #tpu.memory_space<vmem>>, %arg2: memref<1x16x32xf32, #tpu.memory_space<vmem>>, %arg3: memref<8x8xf32, #tpu.memory_space<vmem>>, %arg4: memref<1x1x8xf32, #tpu.memory_space<vmem>>, %arg5: memref<1x1x16xf32, #tpu.memory_space<vmem>>, %arg6: memref<32x96xf32, #tpu.memory_space<vmem>>, %arg7: memref<32x32xf32, #tpu.memory_space<vmem>>, %arg8: memref<32x32xf32, #tpu.memory_space<vmem>>, %arg9: memref<32x64xf32, #tpu.memory_space<vmem>>, %arg10: memref<32x32xf32, #tpu.memory_space<vmem>>, %arg11: memref<32x64xf32, #tpu.memory_space<vmem>>, %arg12: memref<64x32xf32, #tpu.memory_space<vmem>>, %arg13: memref<16x128xf32, #tpu.memory_space<vmem>>, %arg14: memref<1x8x32xf32, #tpu.memory_space<vmem>>, %arg15: memref<8x32xf32, #tpu.memory_space<vmem>>) attributes {dimension_semantics = [#tpu.dimension_semantics<parallel>], iteration_bounds = array<i64: 2>, scalar_prefetch = 0 : i64, scratch_operands = 1 : i64, tpu.core_type = #tpu.core_type<tc>, window_params = [{transform_indices = @transform_0, window_bounds = array<i64: 1, 8, 32>}, {transform_indices = @transform_1, window_bounds = array<i64: 1, 16, 32>}, {pipeline_mode = #tpu.pipeline_mode<synchronous>, transform_indices = @transform_2, window_bounds = array<i64: 8, 8>}, {transform_indices = @transform_3, window_bounds = array<i64: 1, 1, 8>}, {transform_indices = @transform_4, window_bounds = array<i64: 1, 1, 16>}, {pipeline_mode = #tpu.pipeline_mode<synchronous>, transform_indices = @transform_5, window_bounds = array<i64: 32, 96>}, {pipeline_mode = #tpu.pipeline_mode<synchronous>, transform_indices = @transform_6, window_bounds = array<i64: 32, 32>}, {pipeline_mode = #tpu.pipeline_mode<synchronous>, transform_indices = @transform_7, window_bounds = array<i64: 32, 32>}, {pipeline_mode = #tpu.pipeline_mode<synchronous>, transform_indices = @transform_8, window_bounds = array<i64: 32, 64>}, {pipeline_mode = #tpu.pipeline_mode<synchronous>, transform_indices = @transform_9, window_bounds = array<i64: 32, 32>}, {pipeline_mode = #tpu.pipeline_mode<synchronous>, transform_indices = @transform_10, window_bounds = array<i64: 32, 64>}, {pipeline_mode = #tpu.pipeline_mode<synchronous>, transform_indices = @transform_11, window_bounds = array<i64: 64, 32>}, {pipeline_mode = #tpu.pipeline_mode<synchronous>, transform_indices = @transform_12, window_bounds = array<i64: 16, 128>}, {transform_indices = @transform_13, window_bounds = array<i64: 1, 8, 32>}]} {
    %c0 = arith.constant 0 : index
    %c0_0 = arith.constant 0 : index
    %c0_1 = arith.constant 0 : index
    %0 = vector.load %arg1[%c0, %c0_0, %c0_1] : memref<1x8x32xf32, #tpu.memory_space<vmem>>, vector<1x8x32xf32>
    %1 = vector.shape_cast %0 : vector<1x8x32xf32> to vector<8x32xf32>
    %c0_2 = arith.constant 0 : index
    %c0_3 = arith.constant 0 : index
    %c0_4 = arith.constant 0 : index
    %2 = vector.load %arg2[%c0_2, %c0_3, %c0_4] : memref<1x16x32xf32, #tpu.memory_space<vmem>>, vector<1x16x32xf32>
    %3 = vector.shape_cast %2 : vector<1x16x32xf32> to vector<16x32xf32>
    %c0_5 = arith.constant 0 : index
    %c0_6 = arith.constant 0 : index
    %4 = vector.load %arg6[%c0_5, %c0_6] : memref<32x96xf32, #tpu.memory_space<vmem>>, vector<32x96xf32>
    %cst = arith.constant dense<0.000000e+00> : vector<8x96xf32>
    %5 = tpu.matmul %1, %4, %cst {dimension_numbers = #tpu.dot_dimension_numbers<[1], [0], [0], [1], [0, 0, 1, 1], [], []>} : vector<8x32xf32>, vector<32x96xf32>, vector<8x96xf32> -> vector<8x96xf32>
    %c0_7 = arith.constant 0 : index
    %c0_8 = arith.constant 0 : index
    %6 = vector.load %arg13[%c0_7, %c0_8] : memref<16x128xf32, #tpu.memory_space<vmem>>, vector<1x96xf32>
    %7 = vector.broadcast %6 : vector<1x96xf32> to vector<8x96xf32>
    %8 = arith.addf %5, %7 : vector<8x96xf32>
    %9 = vector.extract_strided_slice %8 {offsets = [0, 0], sizes = [8, 32], strides = [1, 1]} : vector<8x96xf32> to vector<8x32xf32>
    %cst_9 = arith.constant 0.353553385 : f32
    %10 = vector.broadcast %cst_9 : f32 to vector<8x32xf32>
    %11 = arith.mulf %9, %10 : vector<8x32xf32>
    %12 = vector.extract_strided_slice %8 {offsets = [0, 32], sizes = [8, 32], strides = [1, 1]} : vector<8x96xf32> to vector<8x32xf32>
    %13 = vector.extract_strided_slice %8 {offsets = [0, 64], sizes = [8, 32], strides = [1, 1]} : vector<8x96xf32> to vector<8x32xf32>
    %c0_10 = arith.constant 0 : index
    %c0_11 = arith.constant 0 : index
    %14 = vector.load %arg3[%c0_10, %c0_11] : memref<8x8xf32, #tpu.memory_space<vmem>>, vector<8x8xf32>
    %c0_12 = arith.constant 0 : index
    %c0_13 = arith.constant 0 : index
    %c0_14 = arith.constant 0 : index
    %15 = vector.load %arg4[%c0_12, %c0_13, %c0_14] : memref<1x1x8xf32, #tpu.memory_space<vmem>>, vector<1x1x8xf32>
    %16 = vector.shape_cast %15 : vector<1x1x8xf32> to vector<1x8xf32>
    %17 = vector.broadcast %16 : vector<1x8xf32> to vector<8x8xf32>
    %18 = arith.addf %14, %17 : vector<8x8xf32>
    %c0_15 = arith.constant 0 : index
    %c0_16 = arith.constant 0 : index
    %19 = vector.load %arg7[%c0_15, %c0_16] : memref<32x32xf32, #tpu.memory_space<vmem>>, vector<32x32xf32>
    %c1 = arith.constant 1 : index
    %c0_17 = arith.constant 0 : index
    %20 = vector.load %arg13[%c1, %c0_17] : memref<16x128xf32, #tpu.memory_space<vmem>>, vector<1x32xf32>
    %21 = vector.extract_strided_slice %11 {offsets = [0, 0], sizes = [8, 8], strides = [1, 1]} : vector<8x32xf32> to vector<8x8xf32>
    %22 = vector.extract_strided_slice %12 {offsets = [0, 0], sizes = [8, 8], strides = [1, 1]} : vector<8x32xf32> to vector<8x8xf32>
    %cst_18 = arith.constant dense<0.000000e+00> : vector<8x8xf32>
    %23 = tpu.matmul %21, %22, %cst_18 {dimension_numbers = #tpu.dot_dimension_numbers<[1], [1], [0], [0], [0, 0, 1, 0], [], []>} : vector<8x8xf32>, vector<8x8xf32>, vector<8x8xf32> -> vector<8x8xf32>
    %24 = arith.addf %23, %18 : vector<8x8xf32>
    %cst_19 = arith.constant dense<0xFF800000> : vector<8xf32>
    %25 = vector.multi_reduction <maximumf>, %24, %cst_19 [1] : vector<8x8xf32> to vector<8xf32>
    %26 = vector.shape_cast %25 : vector<8xf32> to vector<8x1xf32>
    %27 = vector.broadcast %26 : vector<8x1xf32> to vector<8x8xf32>
    %28 = arith.subf %24, %27 : vector<8x8xf32>
    %29 = math.exp %28 : vector<8x8xf32>
    %cst_20 = arith.constant dense<0.000000e+00> : vector<8xf32>
    %30 = vector.multi_reduction <add>, %29, %cst_20 [1] : vector<8x8xf32> to vector<8xf32>
    %31 = vector.shape_cast %30 : vector<8xf32> to vector<8x1xf32>
    %32 = tpu.reciprocal %31 {approx = true} : vector<8x1xf32> -> vector<8x1xf32>
    %33 = vector.broadcast %32 : vector<8x1xf32> to vector<8x8xf32>
    %34 = arith.mulf %29, %33 : vector<8x8xf32>
    %35 = vector.extract_strided_slice %13 {offsets = [0, 0], sizes = [8, 8], strides = [1, 1]} : vector<8x32xf32> to vector<8x8xf32>
    %cst_21 = arith.constant dense<0.000000e+00> : vector<8x8xf32>
    %36 = tpu.matmul %34, %35, %cst_21 {dimension_numbers = #tpu.dot_dimension_numbers<[1], [0], [0], [1], [0, 0, 1, 1], [], []>} : vector<8x8xf32>, vector<8x8xf32>, vector<8x8xf32> -> vector<8x8xf32>
    %c0_22 = arith.constant 0 : index
    %c0_23 = arith.constant 0 : index
    %37 = vector.load %arg15[%c0_22, %c0_23] : memref<8x32xf32, #tpu.memory_space<vmem>>, vector<8x8xf32>
    tpu.vector_store %arg15[%c0_22, %c0_23], %36 {strides = array<i32>} : memref<8x32xf32, #tpu.memory_space<vmem>>, vector<8x8xf32>,
    %38 = vector.extract_strided_slice %11 {offsets = [0, 8], sizes = [8, 8], strides = [1, 1]} : vector<8x32xf32> to vector<8x8xf32>
    %39 = vector.extract_strided_slice %12 {offsets = [0, 8], sizes = [8, 8], strides = [1, 1]} : vector<8x32xf32> to vector<8x8xf32>
    %cst_24 = arith.constant dense<0.000000e+00> : vector<8x8xf32>
    %40 = tpu.matmul %38, %39, %cst_24 {dimension_numbers = #tpu.dot_dimension_numbers<[1], [1], [0], [0], [0, 0, 1, 0], [], []>} : vector<8x8xf32>, vector<8x8xf32>, vector<8x8xf32> -> vector<8x8xf32>
    %41 = arith.addf %40, %18 : vector<8x8xf32>
    %cst_25 = arith.constant dense<0xFF800000> : vector<8xf32>
    %42 = vector.multi_reduction <maximumf>, %41, %cst_25 [1] : vector<8x8xf32> to vector<8xf32>
    %43 = vector.shape_cast %42 : vector<8xf32> to vector<8x1xf32>
    %44 = vector.broadcast %43 : vector<8x1xf32> to vector<8x8xf32>
    %45 = arith.subf %41, %44 : vector<8x8xf32>
    %46 = math.exp %45 : vector<8x8xf32>
    %cst_26 = arith.constant dense<0.000000e+00> : vector<8xf32>
    %47 = vector.multi_reduction <add>, %46, %cst_26 [1] : vector<8x8xf32> to vector<8xf32>
    %48 = vector.shape_cast %47 : vector<8xf32> to vector<8x1xf32>
    %49 = tpu.reciprocal %48 {approx = true} : vector<8x1xf32> -> vector<8x1xf32>
    %50 = vector.broadcast %49 : vector<8x1xf32> to vector<8x8xf32>
    %51 = arith.mulf %46, %50 : vector<8x8xf32>
    %52 = vector.extract_strided_slice %13 {offsets = [0, 8], sizes = [8, 8], strides = [1, 1]} : vector<8x32xf32> to vector<8x8xf32>
    %cst_27 = arith.constant dense<0.000000e+00> : vector<8x8xf32>
    %53 = tpu.matmul %51, %52, %cst_27 {dimension_numbers = #tpu.dot_dimension_numbers<[1], [0], [0], [1], [0, 0, 1, 1], [], []>} : vector<8x8xf32>, vector<8x8xf32>, vector<8x8xf32> -> vector<8x8xf32>
    %c0_28 = arith.constant 0 : index
    %c8 = arith.constant 8 : index
    %54 = vector.load %arg15[%c0_28, %c8] : memref<8x32xf32, #tpu.memory_space<vmem>>, vector<8x8xf32>
    tpu.vector_store %arg15[%c0_28, %c8], %53 {strides = array<i32>} : memref<8x32xf32, #tpu.memory_space<vmem>>, vector<8x8xf32>,
    %55 = vector.extract_strided_slice %11 {offsets = [0, 16], sizes = [8, 8], strides = [1, 1]} : vector<8x32xf32> to vector<8x8xf32>
    %56 = vector.extract_strided_slice %12 {offsets = [0, 16], sizes = [8, 8], strides = [1, 1]} : vector<8x32xf32> to vector<8x8xf32>
    %cst_29 = arith.constant dense<0.000000e+00> : vector<8x8xf32>
    %57 = tpu.matmul %55, %56, %cst_29 {dimension_numbers = #tpu.dot_dimension_numbers<[1], [1], [0], [0], [0, 0, 1, 0], [], []>} : vector<8x8xf32>, vector<8x8xf32>, vector<8x8xf32> -> vector<8x8xf32>
    %58 = arith.addf %57, %18 : vector<8x8xf32>
    %cst_30 = arith.constant dense<0xFF800000> : vector<8xf32>
    %59 = vector.multi_reduction <maximumf>, %58, %cst_30 [1] : vector<8x8xf32> to vector<8xf32>
    %60 = vector.shape_cast %59 : vector<8xf32> to vector<8x1xf32>
    %61 = vector.broadcast %60 : vector<8x1xf32> to vector<8x8xf32>
    %62 = arith.subf %58, %61 : vector<8x8xf32>
    %63 = math.exp %62 : vector<8x8xf32>
    %cst_31 = arith.constant dense<0.000000e+00> : vector<8xf32>
    %64 = vector.multi_reduction <add>, %63, %cst_31 [1] : vector<8x8xf32> to vector<8xf32>
    %65 = vector.shape_cast %64 : vector<8xf32> to vector<8x1xf32>
    %66 = tpu.reciprocal %65 {approx = true} : vector<8x1xf32> -> vector<8x1xf32>
    %67 = vector.broadcast %66 : vector<8x1xf32> to vector<8x8xf32>
    %68 = arith.mulf %63, %67 : vector<8x8xf32>
    %69 = vector.extract_strided_slice %13 {offsets = [0, 16], sizes = [8, 8], strides = [1, 1]} : vector<8x32xf32> to vector<8x8xf32>
    %cst_32 = arith.constant dense<0.000000e+00> : vector<8x8xf32>
    %70 = tpu.matmul %68, %69, %cst_32 {dimension_numbers = #tpu.dot_dimension_numbers<[1], [0], [0], [1], [0, 0, 1, 1], [], []>} : vector<8x8xf32>, vector<8x8xf32>, vector<8x8xf32> -> vector<8x8xf32>
    %c0_33 = arith.constant 0 : index
    %c16 = arith.constant 16 : index
    %71 = vector.load %arg15[%c0_33, %c16] : memref<8x32xf32, #tpu.memory_space<vmem>>, vector<8x8xf32>
    tpu.vector_store %arg15[%c0_33, %c16], %70 {strides = array<i32>} : memref<8x32xf32, #tpu.memory_space<vmem>>, vector<8x8xf32>,
    %72 = vector.extract_strided_slice %11 {offsets = [0, 24], sizes = [8, 8], strides = [1, 1]} : vector<8x32xf32> to vector<8x8xf32>
    %73 = vector.extract_strided_slice %12 {offsets = [0, 24], sizes = [8, 8], strides = [1, 1]} : vector<8x32xf32> to vector<8x8xf32>
    %cst_34 = arith.constant dense<0.000000e+00> : vector<8x8xf32>
    %74 = tpu.matmul %72, %73, %cst_34 {dimension_numbers = #tpu.dot_dimension_numbers<[1], [1], [0], [0], [0, 0, 1, 0], [], []>} : vector<8x8xf32>, vector<8x8xf32>, vector<8x8xf32> -> vector<8x8xf32>
    %75 = arith.addf %74, %18 : vector<8x8xf32>
    %cst_35 = arith.constant dense<0xFF800000> : vector<8xf32>
    %76 = vector.multi_reduction <maximumf>, %75, %cst_35 [1] : vector<8x8xf32> to vector<8xf32>
    %77 = vector.shape_cast %76 : vector<8xf32> to vector<8x1xf32>
    %78 = vector.broadcast %77 : vector<8x1xf32> to vector<8x8xf32>
    %79 = arith.subf %75, %78 : vector<8x8xf32>
    %80 = math.exp %79 : vector<8x8xf32>
    %cst_36 = arith.constant dense<0.000000e+00> : vector<8xf32>
    %81 = vector.multi_reduction <add>, %80, %cst_36 [1] : vector<8x8xf32> to vector<8xf32>
    %82 = vector.shape_cast %81 : vector<8xf32> to vector<8x1xf32>
    %83 = tpu.reciprocal %82 {approx = true} : vector<8x1xf32> -> vector<8x1xf32>
    %84 = vector.broadcast %83 : vector<8x1xf32> to vector<8x8xf32>
    %85 = arith.mulf %80, %84 : vector<8x8xf32>
    %86 = vector.extract_strided_slice %13 {offsets = [0, 24], sizes = [8, 8], strides = [1, 1]} : vector<8x32xf32> to vector<8x8xf32>
    %cst_37 = arith.constant dense<0.000000e+00> : vector<8x8xf32>
    %87 = tpu.matmul %85, %86, %cst_37 {dimension_numbers = #tpu.dot_dimension_numbers<[1], [0], [0], [1], [0, 0, 1, 1], [], []>} : vector<8x8xf32>, vector<8x8xf32>, vector<8x8xf32> -> vector<8x8xf32>
    %c0_38 = arith.constant 0 : index
    %c24 = arith.constant 24 : index
    %88 = vector.load %arg15[%c0_38, %c24] : memref<8x32xf32, #tpu.memory_space<vmem>>, vector<8x8xf32>
    tpu.vector_store %arg15[%c0_38, %c24], %87 {strides = array<i32>} : memref<8x32xf32, #tpu.memory_space<vmem>>, vector<8x8xf32>,
    %c0_39 = arith.constant 0 : index
    %c0_40 = arith.constant 0 : index
    %89 = vector.load %arg15[%c0_39, %c0_40] : memref<8x32xf32, #tpu.memory_space<vmem>>, vector<8x32xf32>
    %cst_41 = arith.constant dense<0.000000e+00> : vector<8x32xf32>
    %90 = tpu.matmul %89, %19, %cst_41 {dimension_numbers = #tpu.dot_dimension_numbers<[1], [0], [0], [1], [0, 0, 1, 1], [], []>} : vector<8x32xf32>, vector<32x32xf32>, vector<8x32xf32> -> vector<8x32xf32>
    %91 = vector.broadcast %20 : vector<1x32xf32> to vector<8x32xf32>
    %92 = arith.addf %90, %91 : vector<8x32xf32>
    %93 = arith.addf %1, %92 : vector<8x32xf32>
    %c7 = arith.constant 7 : index
    %c0_42 = arith.constant 0 : index
    %94 = vector.load %arg13[%c7, %c0_42] : memref<16x128xf32, #tpu.memory_space<vmem>>, vector<1x32xf32>
    %c8_43 = arith.constant 8 : index
    %c0_44 = arith.constant 0 : index
    %95 = vector.load %arg13[%c8_43, %c0_44] : memref<16x128xf32, #tpu.memory_space<vmem>>, vector<1x32xf32>
    %cst_45 = arith.constant dense<0.000000e+00> : vector<8xf32>
    %96 = vector.multi_reduction <add>, %93, %cst_45 [1] : vector<8x32xf32> to vector<8xf32>
    %97 = vector.shape_cast %96 : vector<8xf32> to vector<8x1xf32>
    %cst_46 = arith.constant 3.200000e+01 : f32
    %98 = vector.broadcast %cst_46 : f32 to vector<8x1xf32>
    %99 = arith.divf %97, %98 : vector<8x1xf32>
    %100 = vector.broadcast %99 : vector<8x1xf32> to vector<8x32xf32>
    %101 = arith.subf %93, %100 : vector<8x32xf32>
    %102 = arith.mulf %101, %101 : vector<8x32xf32>
    %cst_47 = arith.constant dense<0.000000e+00> : vector<8xf32>
    %103 = vector.multi_reduction <add>, %102, %cst_47 [1] : vector<8x32xf32> to vector<8xf32>
    %104 = vector.shape_cast %103 : vector<8xf32> to vector<8x1xf32>
    %cst_48 = arith.constant 3.200000e+01 : f32
    %105 = vector.broadcast %cst_48 : f32 to vector<8x1xf32>
    %106 = arith.divf %104, %105 : vector<8x1xf32>
    %107 = vector.broadcast %99 : vector<8x1xf32> to vector<8x32xf32>
    %108 = arith.subf %93, %107 : vector<8x32xf32>
    %cst_49 = arith.constant 9.99999974E-6 : f32
    %109 = vector.broadcast %cst_49 : f32 to vector<8x1xf32>
    %110 = arith.addf %106, %109 : vector<8x1xf32>
    %111 = math.rsqrt %110 : vector<8x1xf32>
    %112 = vector.broadcast %111 : vector<8x1xf32> to vector<8x32xf32>
    %113 = arith.mulf %108, %112 : vector<8x32xf32>
    %114 = vector.broadcast %94 : vector<1x32xf32> to vector<8x32xf32>
    %115 = arith.mulf %113, %114 : vector<8x32xf32>
    %116 = vector.broadcast %95 : vector<1x32xf32> to vector<8x32xf32>
    %117 = arith.addf %115, %116 : vector<8x32xf32>
    %c0_50 = arith.constant 0 : index
    %c0_51 = arith.constant 0 : index
    %118 = vector.load %arg8[%c0_50, %c0_51] : memref<32x32xf32, #tpu.memory_space<vmem>>, vector<32x32xf32>
    %cst_52 = arith.constant dense<0.000000e+00> : vector<8x32xf32>
    %119 = tpu.matmul %117, %118, %cst_52 {dimension_numbers = #tpu.dot_dimension_numbers<[1], [0], [0], [1], [0, 0, 1, 1], [], []>} : vector<8x32xf32>, vector<32x32xf32>, vector<8x32xf32> -> vector<8x32xf32>
    %c2 = arith.constant 2 : index
    %c0_53 = arith.constant 0 : index
    %120 = vector.load %arg13[%c2, %c0_53] : memref<16x128xf32, #tpu.memory_space<vmem>>, vector<1x32xf32>
    %121 = vector.broadcast %120 : vector<1x32xf32> to vector<8x32xf32>
    %122 = arith.addf %119, %121 : vector<8x32xf32>
    %cst_54 = arith.constant 0.353553385 : f32
    %123 = vector.broadcast %cst_54 : f32 to vector<8x32xf32>
    %124 = arith.mulf %122, %123 : vector<8x32xf32>
    %c0_55 = arith.constant 0 : index
    %c0_56 = arith.constant 0 : index
    %125 = vector.load %arg9[%c0_55, %c0_56] : memref<32x64xf32, #tpu.memory_space<vmem>>, vector<32x64xf32>
    %cst_57 = arith.constant dense<0.000000e+00> : vector<16x64xf32>
    %126 = tpu.matmul %3, %125, %cst_57 {dimension_numbers = #tpu.dot_dimension_numbers<[1], [0], [0], [1], [0, 0, 1, 1], [], []>} : vector<16x32xf32>, vector<32x64xf32>, vector<16x64xf32> -> vector<16x64xf32>
    %c3 = arith.constant 3 : index
    %c0_58 = arith.constant 0 : index
    %127 = vector.load %arg13[%c3, %c0_58] : memref<16x128xf32, #tpu.memory_space<vmem>>, vector<1x64xf32>
    %128 = vector.broadcast %127 : vector<1x64xf32> to vector<16x64xf32>
    %129 = arith.addf %126, %128 : vector<16x64xf32>
    %130 = vector.extract_strided_slice %129 {offsets = [0, 0], sizes = [16, 32], strides = [1, 1]} : vector<16x64xf32> to vector<16x32xf32>
    %131 = vector.extract_strided_slice %129 {offsets = [0, 32], sizes = [16, 32], strides = [1, 1]} : vector<16x64xf32> to vector<16x32xf32>
    %c0_59 = arith.constant 0 : index
    %c0_60 = arith.constant 0 : index
    %c0_61 = arith.constant 0 : index
    %132 = vector.load %arg5[%c0_59, %c0_60, %c0_61] : memref<1x1x16xf32, #tpu.memory_space<vmem>>, vector<1x1x16xf32>
    %133 = vector.shape_cast %132 : vector<1x1x16xf32> to vector<1x16xf32>
    %c0_62 = arith.constant 0 : index
    %c0_63 = arith.constant 0 : index
    %134 = vector.load %arg10[%c0_62, %c0_63] : memref<32x32xf32, #tpu.memory_space<vmem>>, vector<32x32xf32>
    %c4 = arith.constant 4 : index
    %c0_64 = arith.constant 0 : index
    %135 = vector.load %arg13[%c4, %c0_64] : memref<16x128xf32, #tpu.memory_space<vmem>>, vector<1x32xf32>
    %136 = vector.extract_strided_slice %124 {offsets = [0, 0], sizes = [8, 8], strides = [1, 1]} : vector<8x32xf32> to vector<8x8xf32>
    %137 = vector.extract_strided_slice %130 {offsets = [0, 0], sizes = [16, 8], strides = [1, 1]} : vector<16x32xf32> to vector<16x8xf32>
    %cst_65 = arith.constant dense<0.000000e+00> : vector<8x16xf32>
    %138 = tpu.matmul %136, %137, %cst_65 {dimension_numbers = #tpu.dot_dimension_numbers<[1], [1], [0], [0], [0, 0, 1, 0], [], []>} : vector<8x8xf32>, vector<16x8xf32>, vector<8x16xf32> -> vector<8x16xf32>
    %139 = vector.broadcast %133 : vector<1x16xf32> to vector<8x16xf32>
    %140 = arith.addf %138, %139 : vector<8x16xf32>
    %cst_66 = arith.constant dense<0xFF800000> : vector<8xf32>
    %141 = vector.multi_reduction <maximumf>, %140, %cst_66 [1] : vector<8x16xf32> to vector<8xf32>
    %142 = vector.shape_cast %141 : vector<8xf32> to vector<8x1xf32>
    %143 = vector.broadcast %142 : vector<8x1xf32> to vector<8x16xf32>
    %144 = arith.subf %140, %143 : vector<8x16xf32>
    %145 = math.exp %144 : vector<8x16xf32>
    %cst_67 = arith.constant dense<0.000000e+00> : vector<8xf32>
    %146 = vector.multi_reduction <add>, %145, %cst_67 [1] : vector<8x16xf32> to vector<8xf32>
    %147 = vector.shape_cast %146 : vector<8xf32> to vector<8x1xf32>
    %148 = tpu.reciprocal %147 {approx = true} : vector<8x1xf32> -> vector<8x1xf32>
    %149 = vector.broadcast %148 : vector<8x1xf32> to vector<8x16xf32>
    %150 = arith.mulf %145, %149 : vector<8x16xf32>
    %151 = vector.extract_strided_slice %131 {offsets = [0, 0], sizes = [16, 8], strides = [1, 1]} : vector<16x32xf32> to vector<16x8xf32>
    %cst_68 = arith.constant dense<0.000000e+00> : vector<8x8xf32>
    %152 = tpu.matmul %150, %151, %cst_68 {dimension_numbers = #tpu.dot_dimension_numbers<[1], [0], [0], [1], [0, 0, 1, 1], [], []>} : vector<8x16xf32>, vector<16x8xf32>, vector<8x8xf32> -> vector<8x8xf32>
    %c0_69 = arith.constant 0 : index
    %c0_70 = arith.constant 0 : index
    %153 = vector.load %arg15[%c0_69, %c0_70] : memref<8x32xf32, #tpu.memory_space<vmem>>, vector<8x8xf32>
    tpu.vector_store %arg15[%c0_69, %c0_70], %152 {strides = array<i32>} : memref<8x32xf32, #tpu.memory_space<vmem>>, vector<8x8xf32>,
    %154 = vector.extract_strided_slice %124 {offsets = [0, 8], sizes = [8, 8], strides = [1, 1]} : vector<8x32xf32> to vector<8x8xf32>
    %155 = vector.extract_strided_slice %130 {offsets = [0, 8], sizes = [16, 8], strides = [1, 1]} : vector<16x32xf32> to vector<16x8xf32>
    %cst_71 = arith.constant dense<0.000000e+00> : vector<8x16xf32>
    %156 = tpu.matmul %154, %155, %cst_71 {dimension_numbers = #tpu.dot_dimension_numbers<[1], [1], [0], [0], [0, 0, 1, 0], [], []>} : vector<8x8xf32>, vector<16x8xf32>, vector<8x16xf32> -> vector<8x16xf32>
    %157 = vector.broadcast %133 : vector<1x16xf32> to vector<8x16xf32>
    %158 = arith.addf %156, %157 : vector<8x16xf32>
    %cst_72 = arith.constant dense<0xFF800000> : vector<8xf32>
    %159 = vector.multi_reduction <maximumf>, %158, %cst_72 [1] : vector<8x16xf32> to vector<8xf32>
    %160 = vector.shape_cast %159 : vector<8xf32> to vector<8x1xf32>
    %161 = vector.broadcast %160 : vector<8x1xf32> to vector<8x16xf32>
    %162 = arith.subf %158, %161 : vector<8x16xf32>
    %163 = math.exp %162 : vector<8x16xf32>
    %cst_73 = arith.constant dense<0.000000e+00> : vector<8xf32>
    %164 = vector.multi_reduction <add>, %163, %cst_73 [1] : vector<8x16xf32> to vector<8xf32>
    %165 = vector.shape_cast %164 : vector<8xf32> to vector<8x1xf32>
    %166 = tpu.reciprocal %165 {approx = true} : vector<8x1xf32> -> vector<8x1xf32>
    %167 = vector.broadcast %166 : vector<8x1xf32> to vector<8x16xf32>
    %168 = arith.mulf %163, %167 : vector<8x16xf32>
    %169 = vector.extract_strided_slice %131 {offsets = [0, 8], sizes = [16, 8], strides = [1, 1]} : vector<16x32xf32> to vector<16x8xf32>
    %cst_74 = arith.constant dense<0.000000e+00> : vector<8x8xf32>
    %170 = tpu.matmul %168, %169, %cst_74 {dimension_numbers = #tpu.dot_dimension_numbers<[1], [0], [0], [1], [0, 0, 1, 1], [], []>} : vector<8x16xf32>, vector<16x8xf32>, vector<8x8xf32> -> vector<8x8xf32>
    %c0_75 = arith.constant 0 : index
    %c8_76 = arith.constant 8 : index
    %171 = vector.load %arg15[%c0_75, %c8_76] : memref<8x32xf32, #tpu.memory_space<vmem>>, vector<8x8xf32>
    tpu.vector_store %arg15[%c0_75, %c8_76], %170 {strides = array<i32>} : memref<8x32xf32, #tpu.memory_space<vmem>>, vector<8x8xf32>,
    %172 = vector.extract_strided_slice %124 {offsets = [0, 16], sizes = [8, 8], strides = [1, 1]} : vector<8x32xf32> to vector<8x8xf32>
    %173 = vector.extract_strided_slice %130 {offsets = [0, 16], sizes = [16, 8], strides = [1, 1]} : vector<16x32xf32> to vector<16x8xf32>
    %cst_77 = arith.constant dense<0.000000e+00> : vector<8x16xf32>
    %174 = tpu.matmul %172, %173, %cst_77 {dimension_numbers = #tpu.dot_dimension_numbers<[1], [1], [0], [0], [0, 0, 1, 0], [], []>} : vector<8x8xf32>, vector<16x8xf32>, vector<8x16xf32> -> vector<8x16xf32>
    %175 = vector.broadcast %133 : vector<1x16xf32> to vector<8x16xf32>
    %176 = arith.addf %174, %175 : vector<8x16xf32>
    %cst_78 = arith.constant dense<0xFF800000> : vector<8xf32>
    %177 = vector.multi_reduction <maximumf>, %176, %cst_78 [1] : vector<8x16xf32> to vector<8xf32>
    %178 = vector.shape_cast %177 : vector<8xf32> to vector<8x1xf32>
    %179 = vector.broadcast %178 : vector<8x1xf32> to vector<8x16xf32>
    %180 = arith.subf %176, %179 : vector<8x16xf32>
    %181 = math.exp %180 : vector<8x16xf32>
    %cst_79 = arith.constant dense<0.000000e+00> : vector<8xf32>
    %182 = vector.multi_reduction <add>, %181, %cst_79 [1] : vector<8x16xf32> to vector<8xf32>
    %183 = vector.shape_cast %182 : vector<8xf32> to vector<8x1xf32>
    %184 = tpu.reciprocal %183 {approx = true} : vector<8x1xf32> -> vector<8x1xf32>
    %185 = vector.broadcast %184 : vector<8x1xf32> to vector<8x16xf32>
    %186 = arith.mulf %181, %185 : vector<8x16xf32>
    %187 = vector.extract_strided_slice %131 {offsets = [0, 16], sizes = [16, 8], strides = [1, 1]} : vector<16x32xf32> to vector<16x8xf32>
    %cst_80 = arith.constant dense<0.000000e+00> : vector<8x8xf32>
    %188 = tpu.matmul %186, %187, %cst_80 {dimension_numbers = #tpu.dot_dimension_numbers<[1], [0], [0], [1], [0, 0, 1, 1], [], []>} : vector<8x16xf32>, vector<16x8xf32>, vector<8x8xf32> -> vector<8x8xf32>
    %c0_81 = arith.constant 0 : index
    %c16_82 = arith.constant 16 : index
    %189 = vector.load %arg15[%c0_81, %c16_82] : memref<8x32xf32, #tpu.memory_space<vmem>>, vector<8x8xf32>
    tpu.vector_store %arg15[%c0_81, %c16_82], %188 {strides = array<i32>} : memref<8x32xf32, #tpu.memory_space<vmem>>, vector<8x8xf32>,
    %190 = vector.extract_strided_slice %124 {offsets = [0, 24], sizes = [8, 8], strides = [1, 1]} : vector<8x32xf32> to vector<8x8xf32>
    %191 = vector.extract_strided_slice %130 {offsets = [0, 24], sizes = [16, 8], strides = [1, 1]} : vector<16x32xf32> to vector<16x8xf32>
    %cst_83 = arith.constant dense<0.000000e+00> : vector<8x16xf32>
    %192 = tpu.matmul %190, %191, %cst_83 {dimension_numbers = #tpu.dot_dimension_numbers<[1], [1], [0], [0], [0, 0, 1, 0], [], []>} : vector<8x8xf32>, vector<16x8xf32>, vector<8x16xf32> -> vector<8x16xf32>
    %193 = vector.broadcast %133 : vector<1x16xf32> to vector<8x16xf32>
    %194 = arith.addf %192, %193 : vector<8x16xf32>
    %cst_84 = arith.constant dense<0xFF800000> : vector<8xf32>
    %195 = vector.multi_reduction <maximumf>, %194, %cst_84 [1] : vector<8x16xf32> to vector<8xf32>
    %196 = vector.shape_cast %195 : vector<8xf32> to vector<8x1xf32>
    %197 = vector.broadcast %196 : vector<8x1xf32> to vector<8x16xf32>
    %198 = arith.subf %194, %197 : vector<8x16xf32>
    %199 = math.exp %198 : vector<8x16xf32>
    %cst_85 = arith.constant dense<0.000000e+00> : vector<8xf32>
    %200 = vector.multi_reduction <add>, %199, %cst_85 [1] : vector<8x16xf32> to vector<8xf32>
    %201 = vector.shape_cast %200 : vector<8xf32> to vector<8x1xf32>
    %202 = tpu.reciprocal %201 {approx = true} : vector<8x1xf32> -> vector<8x1xf32>
    %203 = vector.broadcast %202 : vector<8x1xf32> to vector<8x16xf32>
    %204 = arith.mulf %199, %203 : vector<8x16xf32>
    %205 = vector.extract_strided_slice %131 {offsets = [0, 24], sizes = [16, 8], strides = [1, 1]} : vector<16x32xf32> to vector<16x8xf32>
    %cst_86 = arith.constant dense<0.000000e+00> : vector<8x8xf32>
    %206 = tpu.matmul %204, %205, %cst_86 {dimension_numbers = #tpu.dot_dimension_numbers<[1], [0], [0], [1], [0, 0, 1, 1], [], []>} : vector<8x16xf32>, vector<16x8xf32>, vector<8x8xf32> -> vector<8x8xf32>
    %c0_87 = arith.constant 0 : index
    %c24_88 = arith.constant 24 : index
    %207 = vector.load %arg15[%c0_87, %c24_88] : memref<8x32xf32, #tpu.memory_space<vmem>>, vector<8x8xf32>
    tpu.vector_store %arg15[%c0_87, %c24_88], %206 {strides = array<i32>} : memref<8x32xf32, #tpu.memory_space<vmem>>, vector<8x8xf32>,
    %c0_89 = arith.constant 0 : index
    %c0_90 = arith.constant 0 : index
    %208 = vector.load %arg15[%c0_89, %c0_90] : memref<8x32xf32, #tpu.memory_space<vmem>>, vector<8x32xf32>
    %cst_91 = arith.constant dense<0.000000e+00> : vector<8x32xf32>
    %209 = tpu.matmul %208, %134, %cst_91 {dimension_numbers = #tpu.dot_dimension_numbers<[1], [0], [0], [1], [0, 0, 1, 1], [], []>} : vector<8x32xf32>, vector<32x32xf32>, vector<8x32xf32> -> vector<8x32xf32>
    %210 = vector.broadcast %135 : vector<1x32xf32> to vector<8x32xf32>
    %211 = arith.addf %209, %210 : vector<8x32xf32>
    %212 = arith.addf %117, %211 : vector<8x32xf32>
    %c9 = arith.constant 9 : index
    %c0_92 = arith.constant 0 : index
    %213 = vector.load %arg13[%c9, %c0_92] : memref<16x128xf32, #tpu.memory_space<vmem>>, vector<1x32xf32>
    %c10 = arith.constant 10 : index
    %c0_93 = arith.constant 0 : index
    %214 = vector.load %arg13[%c10, %c0_93] : memref<16x128xf32, #tpu.memory_space<vmem>>, vector<1x32xf32>
    %cst_94 = arith.constant dense<0.000000e+00> : vector<8xf32>
    %215 = vector.multi_reduction <add>, %212, %cst_94 [1] : vector<8x32xf32> to vector<8xf32>
    %216 = vector.shape_cast %215 : vector<8xf32> to vector<8x1xf32>
    %cst_95 = arith.constant 3.200000e+01 : f32
    %217 = vector.broadcast %cst_95 : f32 to vector<8x1xf32>
    %218 = arith.divf %216, %217 : vector<8x1xf32>
    %219 = vector.broadcast %218 : vector<8x1xf32> to vector<8x32xf32>
    %220 = arith.subf %212, %219 : vector<8x32xf32>
    %221 = arith.mulf %220, %220 : vector<8x32xf32>
    %cst_96 = arith.constant dense<0.000000e+00> : vector<8xf32>
    %222 = vector.multi_reduction <add>, %221, %cst_96 [1] : vector<8x32xf32> to vector<8xf32>
    %223 = vector.shape_cast %222 : vector<8xf32> to vector<8x1xf32>
    %cst_97 = arith.constant 3.200000e+01 : f32
    %224 = vector.broadcast %cst_97 : f32 to vector<8x1xf32>
    %225 = arith.divf %223, %224 : vector<8x1xf32>
    %226 = vector.broadcast %218 : vector<8x1xf32> to vector<8x32xf32>
    %227 = arith.subf %212, %226 : vector<8x32xf32>
    %cst_98 = arith.constant 9.99999974E-6 : f32
    %228 = vector.broadcast %cst_98 : f32 to vector<8x1xf32>
    %229 = arith.addf %225, %228 : vector<8x1xf32>
    %230 = math.rsqrt %229 : vector<8x1xf32>
    %231 = vector.broadcast %230 : vector<8x1xf32> to vector<8x32xf32>
    %232 = arith.mulf %227, %231 : vector<8x32xf32>
    %233 = vector.broadcast %213 : vector<1x32xf32> to vector<8x32xf32>
    %234 = arith.mulf %232, %233 : vector<8x32xf32>
    %235 = vector.broadcast %214 : vector<1x32xf32> to vector<8x32xf32>
    %236 = arith.addf %234, %235 : vector<8x32xf32>
    %c0_99 = arith.constant 0 : index
    %c0_100 = arith.constant 0 : index
    %237 = vector.load %arg11[%c0_99, %c0_100] : memref<32x64xf32, #tpu.memory_space<vmem>>, vector<32x64xf32>
    %cst_101 = arith.constant dense<0.000000e+00> : vector<8x64xf32>
    %238 = tpu.matmul %236, %237, %cst_101 {dimension_numbers = #tpu.dot_dimension_numbers<[1], [0], [0], [1], [0, 0, 1, 1], [], []>} : vector<8x32xf32>, vector<32x64xf32>, vector<8x64xf32> -> vector<8x64xf32>
    %c5 = arith.constant 5 : index
    %c0_102 = arith.constant 0 : index
    %239 = vector.load %arg13[%c5, %c0_102] : memref<16x128xf32, #tpu.memory_space<vmem>>, vector<1x64xf32>
    %240 = vector.broadcast %239 : vector<1x64xf32> to vector<8x64xf32>
    %241 = arith.addf %238, %240 : vector<8x64xf32>
    %cst_103 = arith.constant 0.000000e+00 : f32
    %242 = vector.broadcast %cst_103 : f32 to vector<8x64xf32>
    %243 = arith.maximumf %241, %242 : vector<8x64xf32>
    %c0_104 = arith.constant 0 : index
    %c0_105 = arith.constant 0 : index
    %244 = vector.load %arg12[%c0_104, %c0_105] : memref<64x32xf32, #tpu.memory_space<vmem>>, vector<64x32xf32>
    %cst_106 = arith.constant dense<0.000000e+00> : vector<8x32xf32>
    %245 = tpu.matmul %243, %244, %cst_106 {dimension_numbers = #tpu.dot_dimension_numbers<[1], [0], [0], [1], [0, 0, 1, 1], [], []>} : vector<8x64xf32>, vector<64x32xf32>, vector<8x32xf32> -> vector<8x32xf32>
    %c6 = arith.constant 6 : index
    %c0_107 = arith.constant 0 : index
    %246 = vector.load %arg13[%c6, %c0_107] : memref<16x128xf32, #tpu.memory_space<vmem>>, vector<1x32xf32>
    %247 = vector.broadcast %246 : vector<1x32xf32> to vector<8x32xf32>
    %248 = arith.addf %245, %247 : vector<8x32xf32>
    %249 = arith.addf %236, %248 : vector<8x32xf32>
    %c11 = arith.constant 11 : index
    %c0_108 = arith.constant 0 : index
    %250 = vector.load %arg13[%c11, %c0_108] : memref<16x128xf32, #tpu.memory_space<vmem>>, vector<1x32xf32>
    %c12 = arith.constant 12 : index
    %c0_109 = arith.constant 0 : index
    %251 = vector.load %arg13[%c12, %c0_109] : memref<16x128xf32, #tpu.memory_space<vmem>>, vector<1x32xf32>
    %cst_110 = arith.constant dense<0.000000e+00> : vector<8xf32>
    %252 = vector.multi_reduction <add>, %249, %cst_110 [1] : vector<8x32xf32> to vector<8xf32>
    %253 = vector.shape_cast %252 : vector<8xf32> to vector<8x1xf32>
    %cst_111 = arith.constant 3.200000e+01 : f32
    %254 = vector.broadcast %cst_111 : f32 to vector<8x1xf32>
    %255 = arith.divf %253, %254 : vector<8x1xf32>
    %256 = vector.broadcast %255 : vector<8x1xf32> to vector<8x32xf32>
    %257 = arith.subf %249, %256 : vector<8x32xf32>
    %258 = arith.mulf %257, %257 : vector<8x32xf32>
    %cst_112 = arith.constant dense<0.000000e+00> : vector<8xf32>
    %259 = vector.multi_reduction <add>, %258, %cst_112 [1] : vector<8x32xf32> to vector<8xf32>
    %260 = vector.shape_cast %259 : vector<8xf32> to vector<8x1xf32>
    %cst_113 = arith.constant 3.200000e+01 : f32
    %261 = vector.broadcast %cst_113 : f32 to vector<8x1xf32>
    %262 = arith.divf %260, %261 : vector<8x1xf32>
    %263 = vector.broadcast %255 : vector<8x1xf32> to vector<8x32xf32>
    %264 = arith.subf %249, %263 : vector<8x32xf32>
    %cst_114 = arith.constant 9.99999974E-6 : f32
    %265 = vector.broadcast %cst_114 : f32 to vector<8x1xf32>
    %266 = arith.addf %262, %265 : vector<8x1xf32>
    %267 = math.rsqrt %266 : vector<8x1xf32>
    %268 = vector.broadcast %267 : vector<8x1xf32> to vector<8x32xf32>
    %269 = arith.mulf %264, %268 : vector<8x32xf32>
    %270 = vector.broadcast %250 : vector<1x32xf32> to vector<8x32xf32>
    %271 = arith.mulf %269, %270 : vector<8x32xf32>
    %272 = vector.broadcast %251 : vector<1x32xf32> to vector<8x32xf32>
    %273 = arith.addf %271, %272 : vector<8x32xf32>
    %c0_115 = arith.constant 0 : index
    %c0_116 = arith.constant 0 : index
    %c0_117 = arith.constant 0 : index
    %274 = vector.load %arg14[%c0_115, %c0_116, %c0_117] : memref<1x8x32xf32, #tpu.memory_space<vmem>>, vector<1x8x32xf32>
    %275 = vector.shape_cast %274 : vector<1x8x32xf32> to vector<8x32xf32>
    %276 = vector.shape_cast %273 : vector<8x32xf32> to vector<1x8x32xf32>
    tpu.vector_store %arg14[%c0_115, %c0_116, %c0_117], %276 {strides = array<i32>} : memref<1x8x32xf32, #tpu.memory_space<vmem>>, vector<1x8x32xf32>,
    return
  }
  func.func @transform_0(%arg0: i32) -> (i32, i32, i32) {
    %c0_i32 = arith.constant 0 : i32
    %c0_i32_0 = arith.constant 0 : i32
    %c0_i32_1 = arith.constant 0 : i32
    return %arg0, %c0_i32, %c0_i32_0 : i32, i32, i32
  }
  func.func @transform_1(%arg0: i32) -> (i32, i32, i32) {
    %c0_i32 = arith.constant 0 : i32
    %c0_i32_0 = arith.constant 0 : i32
    %c0_i32_1 = arith.constant 0 : i32
    return %arg0, %c0_i32, %c0_i32_0 : i32, i32, i32
  }
  func.func @transform_2(%arg0: i32) -> (i32, i32) {
    %c0_i32 = arith.constant 0 : i32
    %c0_i32_0 = arith.constant 0 : i32
    %c0_i32_1 = arith.constant 0 : i32
    return %c0_i32, %c0_i32_0 : i32, i32
  }
  func.func @transform_3(%arg0: i32) -> (i32, i32, i32) {
    %c0_i32 = arith.constant 0 : i32
    %c0_i32_0 = arith.constant 0 : i32
    %c0_i32_1 = arith.constant 0 : i32
    return %arg0, %c0_i32, %c0_i32_0 : i32, i32, i32
  }
  func.func @transform_4(%arg0: i32) -> (i32, i32, i32) {
    %c0_i32 = arith.constant 0 : i32
    %c0_i32_0 = arith.constant 0 : i32
    %c0_i32_1 = arith.constant 0 : i32
    return %arg0, %c0_i32, %c0_i32_0 : i32, i32, i32
  }
  func.func @transform_5(%arg0: i32) -> (i32, i32) {
    %c0_i32 = arith.constant 0 : i32
    %c0_i32_0 = arith.constant 0 : i32
    %c0_i32_1 = arith.constant 0 : i32
    return %c0_i32, %c0_i32_0 : i32, i32
  }
  func.func @transform_6(%arg0: i32) -> (i32, i32) {
    %c0_i32 = arith.constant 0 : i32
    %c0_i32_0 = arith.constant 0 : i32
    %c0_i32_1 = arith.constant 0 : i32
    return %c0_i32, %c0_i32_0 : i32, i32
  }
  func.func @transform_7(%arg0: i32) -> (i32, i32) {
    %c0_i32 = arith.constant 0 : i32
    %c0_i32_0 = arith.constant 0 : i32
    %c0_i32_1 = arith.constant 0 : i32
    return %c0_i32, %c0_i32_0 : i32, i32
  }
  func.func @transform_8(%arg0: i32) -> (i32, i32) {
    %c0_i32 = arith.constant 0 : i32
    %c0_i32_0 = arith.constant 0 : i32
    %c0_i32_1 = arith.constant 0 : i32
    return %c0_i32, %c0_i32_0 : i32, i32
  }
  func.func @transform_9(%arg0: i32) -> (i32, i32) {
    %c0_i32 = arith.constant 0 : i32
    %c0_i32_0 = arith.constant 0 : i32
    %c0_i32_1 = arith.constant 0 : i32
    return %c0_i32, %c0_i32_0 : i32, i32
  }
  func.func @transform_10(%arg0: i32) -> (i32, i32) {
    %c0_i32 = arith.constant 0 : i32
    %c0_i32_0 = arith.constant 0 : i32
    %c0_i32_1 = arith.constant 0 : i32
    return %c0_i32, %c0_i32_0 : i32, i32
  }
  func.func @transform_11(%arg0: i32) -> (i32, i32) {
    %c0_i32 = arith.constant 0 : i32
    %c0_i32_0 = arith.constant 0 : i32
    %c0_i32_1 = arith.constant 0 : i32
    return %c0_i32, %c0_i32_0 : i32, i32
  }
  func.func @transform_12(%arg0: i32) -> (i32, i32) {
    %c0_i32 = arith.constant 0 : i32
    %c0_i32_0 = arith.constant 0 : i32
    %c0_i32_1 = arith.constant 0 : i32
    return %c0_i32, %c0_i32_0 : i32, i32
  }
  func.func @transform_13(%arg0: i32) -> (i32, i32, i32) {
    %c0_i32 = arith.constant 0 : i32
    %c0_i32_0 = arith.constant 0 : i32
    %c0_i32_1 = arith.constant 0 : i32
    return %arg0, %c0_i32, %c0_i32_0 : i32, i32, i32
  }
}

</mosaic_0001>

<bundles_post_ra>
// kernel: tpu_custom_call.1
= control target key start
LH: loop header
LB: loop body
LE: loop exit
PB: predicated region body
PF: predicated region fallthrough
CT: control target
= control target key end

     0   :  { %s4430_s0 = inlined_call_operand.hbm [shape: f32[2,8,32], index: 0, kind: input, shape index: {}]   ;;  %s4431_s1 = inlined_call_operand.vmem [shape: f32[2,16,32], index: 1, kind: input, shape index: {}]   ;;  %s4432_s2 = inlined_call_operand.hbm [shape: f32[8,8], index: 2, kind: input, shape index: {}]   ;;  %s4433_s3 = inlined_call_operand.vmem [shape: f32[2,1,8], index: 3, kind: input, shape index: {}]   ;;  %s4434_s4 = inlined_call_operand.vmem [shape: f32[2,1,16], index: 4, kind: input, shape index: {}]   ;;  %s4435_s5 = inlined_call_operand.vmem [shape: f32[32,96], index: 5, kind: input, shape index: {}]   ;;  %s4436_s6 = inlined_call_operand.vmem [shape: f32[32,32], index: 6, kind: input, shape index: {}]   ;;  %s4437_s7 = inlined_call_operand.hbm [shape: f32[32,32], index: 7, kind: input, shape index: {}]   ;;  %s4438_s8 = inlined_call_operand.hbm [shape: f32[32,64], index: 8, kind: input, shape index: {}]   ;;  %s4439_s9 = inlined_call_operand.hbm [shape: f32[32,32], index: 9, kind: input, shape index: {}]   ;;  %s4440_s10 = inlined_call_operand.hbm [shape: f32[32,64], index: 10, kind: input, shape index: {}]   ;;  %s4441_s11 = inlined_call_operand.vmem [shape: f32[64,32], index: 11, kind: input, shape index: {}]   ;;  %s4442_s12 = inlined_call_operand.hbm [shape: f32[16,128], index: 12, kind: input, shape index: {}]   ;;  %s4443_s13 = inlined_call_operand.hbm [shape: f32[2,8,32], index: 13, kind: output, shape index: {}]  }
   0x1   :  { %4455 = sst [smem:[#allocation21_spill]] %s4431_s1 }
   0x2   :  { %4456 = sst [smem:[#allocation22_spill]] %s4432_s2 }
   0x3   :  { %4457 = sst [smem:[#allocation23_spill]] %s4434_s4 }
   0x4   :  { %4458 = sst [smem:[#allocation24_spill]] %s4438_s8 }
   0x5   :  { %4459 = sst [smem:[#allocation25_spill]] %s4441_s11 }
   0x6   :  { %4460 = sst [smem:[#allocation26_spill]] %s4443_s13 }
   0x7   :  { %18 = vsyncpa [#allocation4], 0 }
   0x8   :  { %20 = vsyncpa [#allocation4 + $0x1], 0 }
   0x9   :  { %21 = vsyncpa [#allocation7], 0 }
   0xa   :  { %22 = vsyncpa [#allocation10], 0 }
   0xb   :  { %23 = vsyncpa [#allocation13], 0 }
   0xc   :  { %24 = vsyncpa [#allocation5], 0 }
   0xd   :  { %26 = vsyncpa [#allocation5 + $0x1], 0  ;;  %s3825_s25 = smov 0   ;;  %s3827_s26 = smov 0  }
   0xe   :  { %s3829_s27 = smov 0   ;;  %s3831_s28 = smov 0  }
   0xf LB: > { %s3728_s29 = smov [#allocation6]   ;;  %s3846_s14 = sadd.s32 4294967295, %s3726_s28   ;;  %s3726_s28 = sphi %s3831_s28, %s4496_s28   ;;  %s3722_s27 = sphi %s3829_s27, %s4495_s27   ;;  %s3718_s26 = sphi %s3827_s26, %s4494_s26   ;;  %s3714_s25 = sphi %s3825_s25, %s4493_s25  }
  0x10   : > { %s369_s30 = sshll.u32 %s3728_s29, 4  ;;  %p2835_p0 = scmp.ge.s32.totalorder %s3726_s28, 1  ;;  %s370_s30 = int_to_ptr.vmem [resolvable:$true] %s369_s30 }
  0x11   : > { %p4445_p1 = scmp.eq.s32.totalorder %s3846_s14, 0  ;;  %p356_p2 = scmp.lt.s32.totalorder %s3726_s28, 3 }
  0x12   : > { %s3729_s16 = smov [#allocation9]   ;;  %s3730_s19 = smov [#allocation12]  }
  0x13   : > { %p3851_p3 = pnand %p2835_p0, %p356_p2  ;;  %s398_s17 = sshll.u32 %s3729_s16, 4  ;;  %s3864_s17 = int_to_ptr.vmem [resolvable:$true] %s398_s17 }
  0x14   : > { %s424_s20 = sshll.u32 %s3730_s19, 4  ;;  %s4463_s2 = sld [smem:[#allocation22_spill]]  ;;  %s3866_s20 = int_to_ptr.vmem [resolvable:$true] %s424_s20 }
  0x15   : > { %s4461_s15 = scalar_select %p3851_p3, 1, 0 }
  0x16   : > { %p3279_p5 = pneg %p3851_p3 }
  0x18   : > { %p3860_p6 = pnand %p3279_p5, %p4445_p1 }
  0x1a   : > { %s3450_s23 = scalar_lea.hbm %s4463_s2, 128  ;;  %p3876_p8 = pneg %p3860_p6 }
  0x1b   : > { %p3451_p7 = scmp.ne.s32.totalorder %s4463_s2, %s3450_s23  ;;  %p3457_p11 = scmp.lt.u32.totalorder %s3450_s23, %s4463_s2 }
  0x1d   : > { %p3453_p9 = pnand %p3876_p8, %p3451_p7 }
  0x1f   : > { %p3454_p10 = pneg %p3453_p9 }
  0x21   : > { %p3459_p12 = pnand %p3457_p11, %p3454_p10 }
  0x23   : > { %3462 = shalt.err (!%p3459_p12)
}
  0x24   : > { %s3463_s21 = scalar_lea.vmem %s370_s30, 128  ;;  %p3471_p5 = scmp.lt.s32.totalorder %s370_s30, %s370_s30 }
  0x25   : > { %p3464_p13 = scmp.ne.s32.totalorder %s370_s30, %s3463_s21  ;;  %p3472_p4 = scmp.lt.s32.totalorder %s3463_s21, %s3463_s21 }
  0x27   : > { %p3466_p0 = pnand %p3464_p13, %p3876_p8  ;;  %p3473_p1 = por %p3472_p4, %p3471_p5 }
  0x29   : > { %p3467_p2 = pneg %p3466_p0 }
  0x2b   : > { %p3474_p3 = pnand %p3473_p1, %p3467_p2 }
  0x2d   : > { %3477 = shalt.err (!%p3474_p3)
}
  0x2e   : > { %3282 = dma.hbm_to_vmem [thread:$0]  (!%p3860_p6), %s4463_s2, 128, %s370_s30, [#allocation7]  }
  0x2f   : > { %s4465_s8 = sld [smem:[#allocation24_spill]] }
  0x35   : > { %s3478_s29 = scalar_lea.hbm %s4465_s8, 512 }
  0x36   : > { %p3479_p7 = scmp.ne.s32.totalorder %s4465_s8, %s3478_s29  ;;  %p3485_p1 = scmp.lt.u32.totalorder %s3478_s29, %s4465_s8 }
  0x38   : > { %p3481_p9 = pnand %p3479_p7, %p3876_p8 }
  0x3a   : > { %p3482_p4 = pneg %p3481_p9 }
  0x3c   : > { %p3487_p3 = pnand %p3485_p1, %p3482_p4 }
  0x3e   : > { %3490 = shalt.err (!%p3487_p3)
}
  0x3f   : > { %s3491_s30 = scalar_lea.vmem %s3864_s17, 512  ;;  %p3499_p13 = scmp.lt.s32.totalorder %s3864_s17, %s3864_s17 }
  0x40   : > { %p3492_p10 = scmp.ne.s32.totalorder %s3864_s17, %s3491_s30  ;;  %p3500_p0 = scmp.lt.s32.totalorder %s3491_s30, %s3491_s30 }
  0x42   : > { %p3494_p11 = pnand %p3492_p10, %p3876_p8  ;;  %p3501_p2 = por %p3500_p0, %p3499_p13 }
  0x44   : > { %p3495_p12 = pneg %p3494_p11 }
  0x46   : > { %p3502_p5 = pnand %p3501_p2, %p3495_p12 }
  0x48   : > { %3505 = shalt.err (!%p3502_p5)
}
  0x49   : > { %s3731_s11 = smov 128   ;;  %s3732_s4 = smov 8  }
  0x4a   : > { %3288 = dma.hbm_to_vmem [thread:$0]  (!%p3860_p6), %s4465_s8, 512, %s3864_s17, [#allocation10], %s3731_s11, %s3731_s11, %s3732_s4  }
  0x4b   : > { %s3506_s29 = scalar_lea.hbm %s4440_s10, 512 }
  0x4c   : > { %p3507_p7 = scmp.ne.s32.totalorder %s4440_s10, %s3506_s29  ;;  %p3513_p1 = scmp.lt.u32.totalorder %s3506_s29, %s4440_s10 }
  0x4e   : > { %p3509_p9 = pnand %p3507_p7, %p3876_p8 }
  0x50   : > { %p3510_p4 = pneg %p3509_p9 }
  0x52   : > { %p3515_p3 = pnand %p3513_p1, %p3510_p4 }
  0x54   : > { %3518 = shalt.err (!%p3515_p3)
}
  0x55   : > { %s3519_s17 = scalar_lea.vmem %s3866_s20, 512  ;;  %p3527_p13 = scmp.lt.s32.totalorder %s3866_s20, %s3866_s20 }
  0x56   : > { %p3520_p10 = scmp.ne.s32.totalorder %s3866_s20, %s3519_s17  ;;  %p3528_p0 = scmp.lt.s32.totalorder %s3519_s17, %s3519_s17 }
  0x58   : > { %p3522_p11 = pnand %p3520_p10, %p3876_p8  ;;  %p3529_p2 = por %p3528_p0, %p3527_p13 }
  0x5a   : > { %p3523_p12 = pneg %p3522_p11 }
  0x5c   : > { %p3530_p5 = pnand %p3529_p2, %p3523_p12 }
  0x5e   : > { %3533 = shalt.err (!%p3530_p5)
}
  0x5f   : > { %3294 = dma.hbm_to_vmem [thread:$0]  (!%p3860_p6), %s4440_s10, 512, %s3866_s20, [#allocation13], %s3731_s11, %s3731_s11, %s3732_s4  }
  0x60   : > { %s3733_s24 = smov [#allocation8]   ;;  %s3734_s23 = smov [#allocation11]  }
  0x61   : > { %s385_s13 = sshll.u32 %s3733_s24, 4  ;;  %s411_s29 = sshll.u32 %s3734_s23, 4  ;;  %s386_s13 = int_to_ptr.vmem [resolvable:$true] %s385_s13  ;;  %s412_s29 = int_to_ptr.vmem [resolvable:$true] %s411_s29 }
  0x62   : > { %s3534_s30 = scalar_lea.hbm %s4437_s7, 512 }
  0x63   : > { %p3535_p7 = scmp.ne.s32.totalorder %s4437_s7, %s3534_s30  ;;  %p3541_p1 = scmp.lt.u32.totalorder %s3534_s30, %s4437_s7 }
  0x65   : > { %p3537_p9 = pnand %p3535_p7, %p3876_p8 }
  0x67   : > { %p3538_p4 = pneg %p3537_p9 }
  0x69   : > { %p3543_p3 = pnand %p3541_p1, %p3538_p4 }
  0x6b   : > { %3546 = shalt.err (!%p3543_p3)
}
  0x6c   : > { %s3547_s20 = scalar_lea.vmem %s386_s13, 512  ;;  %p3555_p13 = scmp.lt.s32.totalorder %s386_s13, %s386_s13 }
  0x6d   : > { %p3548_p10 = scmp.ne.s32.totalorder %s386_s13, %s3547_s20  ;;  %p3556_p0 = scmp.lt.s32.totalorder %s3547_s20, %s3547_s20 }
  0x6f   : > { %p3550_p11 = pnand %p3548_p10, %p3876_p8  ;;  %p3557_p2 = por %p3556_p0, %p3555_p13 }
  0x71   : > { %p3551_p12 = pneg %p3550_p11 }
  0x73   : > { %p3558_p5 = pnand %p3557_p2, %p3551_p12 }
  0x75   : > { %3561 = shalt.err (!%p3558_p5)
}
  0x76   : > { %3285 = dma.hbm_to_vmem [thread:$0]  (!%p3860_p6), %s4437_s7, 512, %s386_s13, [#allocation7], %s3731_s11, %s3731_s11, %s3732_s4  }
  0x77   : > { %s3562_s23 = scalar_lea.hbm %s4439_s9, 512 }
  0x78   : > { %p3563_p7 = scmp.ne.s32.totalorder %s4439_s9, %s3562_s23  ;;  %p3569_p1 = scmp.lt.u32.totalorder %s3562_s23, %s4439_s9 }
  0x7a   : > { %p3565_p9 = pnand %p3563_p7, %p3876_p8 }
  0x7c   : > { %p3566_p4 = pneg %p3565_p9 }
  0x7e   : > { %p3571_p3 = pnand %p3569_p1, %p3566_p4 }
  0x80   : > { %3574 = shalt.err (!%p3571_p3)
}
  0x81   : > { %s3575_s2 = scalar_lea.vmem %s412_s29, 512  ;;  %p3583_p13 = scmp.lt.s32.totalorder %s412_s29, %s412_s29 }
  0x82   : > { %p3576_p10 = scmp.ne.s32.totalorder %s412_s29, %s3575_s2  ;;  %p3584_p0 = scmp.lt.s32.totalorder %s3575_s2, %s3575_s2 }
  0x84   : > { %p3578_p11 = pnand %p3576_p10, %p3876_p8  ;;  %p3585_p2 = por %p3584_p0, %p3583_p13 }
  0x86   : > { %p3579_p12 = pneg %p3578_p11 }
  0x88   : > { %p3586_p5 = pnand %p3585_p2, %p3579_p12 }
  0x8a   : > { %3589 = shalt.err (!%p3586_p5)
}
  0x8b   : > { %3291 = dma.hbm_to_vmem [thread:$0]  (!%p3860_p6), %s4439_s9, 512, %s412_s29, [#allocation10], %s3731_s11, %s3731_s11, %s3732_s4  }
  0x8c   : > { %s3735_s1 = smov [#allocation14]   ;;  %s3590_s23 = scalar_lea.hbm %s4442_s12, 256 }
  0x8d   : > { %s440_s8 = sshll.u32 %s3735_s1, 4  ;;  %p3591_p7 = scmp.ne.s32.totalorder %s4442_s12, %s3590_s23  ;;  %s441_s8 = int_to_ptr.vmem [resolvable:$true] %s440_s8 }
  0x8e   : > { %p3597_p1 = scmp.lt.u32.totalorder %s3590_s23, %s4442_s12 }
  0x8f   : > { %p3593_p9 = pnand %p3591_p7, %p3876_p8 }
  0x91   : > { %p3594_p4 = pneg %p3593_p9 }
  0x93   : > { %p3599_p3 = pnand %p3597_p1, %p3594_p4 }
  0x95   : > { %3602 = shalt.err (!%p3599_p3)
}
  0x96   : > { %s3603_s29 = scalar_lea.vmem %s441_s8, 256  ;;  %p3611_p13 = scmp.lt.s32.totalorder %s441_s8, %s441_s8 }
  0x97   : > { %p3604_p10 = scmp.ne.s32.totalorder %s441_s8, %s3603_s29  ;;  %p3612_p0 = scmp.lt.s32.totalorder %s3603_s29, %s3603_s29 }
  0x99   : > { %p3606_p11 = pnand %p3604_p10, %p3876_p8  ;;  %p3613_p2 = por %p3612_p0, %p3611_p13 }
  0x9b   : > { %p3607_p12 = pneg %p3606_p11 }
  0x9d   : > { %p3614_p5 = pnand %p3613_p2, %p3607_p12 }
  0x9f   : > { %3617 = shalt.err (!%p3614_p5)
}
  0xa0   : > { %3297 = dma.hbm_to_vmem [thread:$0]  (!%p3860_p6), %s4442_s12, 256, %s441_s8, [#allocation13], %s3731_s11, %s3731_s11, %s3732_s4  }
  0xa1   : > { %s2834_s18 = sadd.s32 4294967294, %s3726_s28   ;;  %s4009_s16 = sadd.s32 1, %s3726_s28  }
  0xa2   : > { %s36_s20 = ssub.s32 %s3726_s28, %s4009_s16  ;;  %s39_s1 = sadd.s32 1, %s3722_s27 }
  0xa3   : > { %p37_p8 = scmp.eq.s32.totalorder %s36_s20, 0  ;;  %p46_p7 = scmp.ne.s32.totalorder %s3722_s27, %s3718_s26 }
  0xa4   : > { %p47_p9 = scmp.eq.s32.totalorder %s3726_s28, 0  ;;  %p52_p4 = scmp.ne.s32.totalorder %s3718_s26, %s3714_s25 }
  0xa5   : > { %s4020_s22 = scalar_select %p37_p8, %s3722_s27, %s39_s1  }
  0xa6   : > { %p4022_p1 = por %p47_p9, %p46_p7  ;;  %p4467_p3 = scmp.eq.s32.totalorder %s3846_s14, 0 }
  0xa7   : > { %p343_p10 = scmp.eq.s32.totalorder %s3846_s14, 1  ;;  %p349_p11 = scmp.eq.s32.totalorder %s2834_s18, 1 }
  0xa8   : > { %p4028_p6 = por %p4467_p3, %p52_p4  ;;  %p3312_p12 = scmp.lt.s32.totalorder %s3726_s28, 2 }
  0xa9   : > { %s454_s4 = sand.u32 1, %s3722_s27   ;;  %p4035_p13 = por %p343_p10, %p46_p7 }
  0xaa   : > { %p4039_p0 = por %p349_p11, %p52_p4  ;;  %s2843_s19 = sshll.u32 %s454_s4, 3 }
  0xab   : > { %s4469_s8 = scalar_select %p4035_p13, 1, 0 }
  0xac   : > { %s4470_s23 = scalar_select %p4039_p0, 1, 0 }
  0xad   : > { %s2844_s21 = sshll.u32 %s3726_s28, 7  ;;  %s458_s2 = scalar_lea.vmem [#allocation3], %s2843_s19 }
  0xae   : > { %s4047_s29 = scalar_lea.hbm %s4430_s0, %s2844_s21  ;;  %s465_s13 = sshll.u32 %s458_s2, 4  ;;  %s4049_s13 = int_to_ptr.vmem [resolvable:$true] %s465_s13 }
  0xaf   : > { %p4053_p2 = pnand %p3312_p12, %p4022_p1  ;;  %s455_s20 = scalar_lea.sflag [#allocation4], %s454_s4 }
  0xb0   : > { %s3618_s1 = scalar_lea.hbm %s4047_s29, 128  ;;  %s3623_s30 = scalar_lea.hbm %s4430_s0, 256 }
  0xb1   : > { %p3619_p5 = scmp.ne.s32.totalorder %s4047_s29, %s3618_s1  ;;  %p3620_p8 = pneg %p4053_p2 }
  0xb2   : > { %p3624_p4 = scmp.lt.u32.totalorder %s4047_s29, %s4430_s0  ;;  %p3625_p1 = scmp.lt.u32.totalorder %s3623_s30, %s3618_s1 }
  0xb3   : > { %p3621_p7 = pnand %p3620_p8, %p3619_p5  ;;  %p3627_p10 = scmp.lt.u32.totalorder %s3618_s1, %s4047_s29 }
  0xb4   : > { %p3626_p3 = por %p3625_p1, %p3624_p4 }
  0xb5   : > { %p3622_p9 = pneg %p3621_p7 }
  0xb6   : > { %p3628_p11 = por %p3627_p10, %p3626_p3 }
  0xb8   : > { %p3629_p12 = pnand %p3628_p11, %p3622_p9 }
  0xba   : > { %3632 = shalt.err (!%p3629_p12)
}
  0xbb   : > { %s3633_s4 = scalar_lea.vmem %s4049_s13, 128  ;;  %s3736_s2 = smov [#allocation3]  }
  0xbc   : > { %p3634_p5 = scmp.ne.s32.totalorder %s4049_s13, %s3633_s4  ;;  %s3638_s19 = sshll.u32 %s3736_s2, 4  ;;  %s3639_s19 = int_to_ptr.vmem [resolvable:$false] %s3638_s19 }
  0xbd   : > { %s3640_s21 = scalar_lea.vmem %s3639_s19, 256  ;;  %p3641_p13 = scmp.lt.s32.totalorder %s4049_s13, %s3639_s19 }
  0xbe   : > { %p3636_p7 = pnand %p3634_p5, %p3620_p8  ;;  %p3642_p4 = scmp.lt.s32.totalorder %s3640_s21, %s3633_s4 }
  0xc0   : > { %p3637_p0 = pneg %p3636_p7  ;;  %p3643_p1 = por %p3642_p4, %p3641_p13 }
  0xc2   : > { %p3644_p3 = pnand %p3643_p1, %p3637_p0 }
  0xc4   : > { %3647 = shalt.err (!%p3644_p3)
}
  0xc5   : > { %3301 = dma.hbm_to_vmem [thread:$0]  (!%p4053_p2), %s4047_s29, 128, %s4049_s13, %s455_s20  }
  0xc6   : > { %p4472_p9 = scmp.ne.s32.totalorder %s4461_s15, 0 }
  0xc7   : > { %s4085_s1 = sand.u32 (!%p4472_p9), 1, %s3718_s26  }
  0xc8   : > { %494 = sbr.rel (%p4472_p9) target bundleno = 5567 (0x15bf), region = 72  ;;  %s4449_s30 = sshll.u32 (!%p4472_p9), %s4085_s1, 3 }
  0xc9   : > { %s497_s24 = scalar_lea.sflag (!%p4472_p9), [#allocation4], %s4085_s1  ;;  %s500_s17 = scalar_lea.vmem (!%p4472_p9), [#allocation3], %s4449_s30 }
  0xcf   : > { %3693 = dma.done.wait (%p4028_p6), %s497_s24, 128  }
  0xd0   : > { %3695 = vsyncadd (%p4028_p6), %s497_s24, 4294967168  ;;  %p4473_p13 = scmp.eq.s32.totalorder %s3846_s14, 0 }
  0xd2   : > { %3697 = dma.done.wait (%p4473_p13), [#allocation7], 640   ;;  %p4474_p0 = pmov %p4473_p13 }
  0xd4   : > { %3699 = vsyncadd (%p4474_p0), [#allocation7], 4294966656  ;;  %p4475_p2 = pmov %p4474_p0 }
  0xd5   : > { %p4476_p8 = pmov %p4474_p0 }
  0xd6   : > { %3701 = dma.done.wait (%p4475_p2), [#allocation10], 1024  }
  0xd7   : > { %3703 = vsyncadd (%p4476_p8), [#allocation10], 4294966272  ;;  %p4477_p10 = pmov %p4474_p0 }
  0xd8   : > { %p4478_p11 = pmov %p4474_p0 }
  0xd9   : > { %3705 = dma.done.wait (%p4477_p10), [#allocation13], 768  }
  0xda   : > { %3707 = vsyncadd (%p4478_p11), [#allocation13], 4294966528  ;;  %v3737_v0 = vmov 0.0|0.0   ;;  %vm3738_vm0 = vmmov 0   ;;  %v3739_v1 = vmov 0.0   ;;  %v592_v2 = vld [vmem:[%s4435_s5] sm:$0xff] }
  0xdb   : > { %3173 = vmatprep.subr.bf16.mxu1 %v3737_v0  ;;  %3000 = vmatprep.mubr.msk.f32.mxu1 %vm3738_vm0, %v3739_v1  ;;  %v593_v3 = vld [vmem:[%s4435_s5 + $0x8] sm:$0xff]  ;;  %v594_v4 = vld [vmem:[%s4435_s5 + $0x10] sm:$0xff]  ;;  %v595_v6 = vld [vmem:[%s4435_s5 + $0x18] sm:$0xff]  ;;  %vm601_vm1 = vcmask 261120   ;;  %s3740_s19 = smov 96   ;;  %s3741_s21 = smov 120  }
  0xdc   : > { %3013 = vmatprep.subr.mxu0 %v3739_v1  ;;  %3015 = vmatprep.mubr.msk.f32.mxu0 %vm3738_vm0, %v3739_v1  ;;  %v3174_v5 = vpack.c.bf16 %v593_v3, %v592_v2  ;;  %v3177_v7 = vpack.c.bf16 %v595_v6, %v594_v4  ;;  %v4126_v8 = vld [vmem:[%s500_s17] sm:$0xff]  ;;  %v2856_v9 = vld [vmem:[#allocation14] ss:$0 sm:$0xff]  ;;  %s4454_s24 = smov 88   ;;  %s4453_s17 = smov 80   ;;  %vm693_vm2 = vcmask 64512  }
  0xdd   : > { %s3744_s15 = smov 112   ;;  %s4450_s11 = smov 72   ;;  %v676_v21 = vld [vmem:[#allocation6] sm:$0xff]  ;;  %vm1026_vm3 = vcmask 130112   ;;  %vm1197_vm4 = vcmask 195712   ;;  %vm1368_vm5 = vcmask 261312   ;;  %vm4246_vm6 = vmpackc.low %vm693_vm2, %vm693_vm2 }
  0xde   : > { %3175 = vmatpush3.bf16.msra.mxu1 %v3174_v5  ;;  %s4451_s29 = smov 104   ;;  %p578_p6 = scmp.lt.s32.totalorder %s3846_s14, 1  ;;  %vm1739_vm7 = vcmask 130048   ;;  %vm2562_vm8 = vcmask 523264  }
  0xdf   : > { %3176 = vmatprep.subr.bf16.mxu1 %v3737_v0  ;;  %s3747_s2 = smov 56   ;;  %s3748_s18 = smov 64  }
  0xe0   : > { %s4169_s13 = scalar_select %p578_p6, %s3846_s14, 1 }
  0xe1   : > { %s3749_s20 = smov 48   ;;  %s3753_s30 = smov 24  }
  0xe2   : > { %3178 = vmatpush3.bf16.msra.mxu1 %v3177_v7  ;;  %s585_s4 = scalar_lea.vmem %s4433_s3, %s4169_s13  ;;  %p4490_p5 = scmp.ne.s32.totalorder %s4469_s8, 0 }
  0xe3   : > { %3003 = vmatprep.subr.mxu1 %v3739_v1  ;;  %v2858_v22 = vld [vmem:[%s585_s4] ss:$0 sm:$0xff]  ;;  %s3750_s4 = smov 40  }
  0xe4   : > { %v684_v23 = vadd.f32 %v2858_v22, %v676_v21  ;;  %v687_v22 = vld [vmem:[%s4436_s6 + $0x10] sm:$0xff] }
  0xe5   : > { %3001 = vmatmul.mubr.msk.f32.vlgmr.msra.gmra.mrb[0].mxu1 %vm601_vm1, %v4126_v8 }
  0xe6   : > { %3005 = vmatprep.mubr.msk.f32.mxu1 %vm3738_vm0, %v3739_v1 }
 0x1b8   : > { %v671_v10 = vpop.f32.mrb[0].mxu1 }
 0x1b9   : > { %v4133_v11 = vadd.f32 %v2856_v9, %v671_v10  ;;  %v3002_v12 = vpop.f32.mrb[1].mxu1 }
 0x1bb   : > { %691 = vrot.lane.b32.xlu0 %v4133_v11, %s3740_s19  ;;  %v675_v13 = vmul.f32 0.35355338, %v4133_v11 }
 0x1bd   : > { %857 = vrot.lane.b32.xlu1 %v675_v13, %s3741_s21 }
 0x1bf   : > { %859 = vrot.lane.b32.xlu0 %v4133_v11, %s4454_s24  ;;  %s2911_s24 = sshll.u32 %s4169_s13, 4 }
 0x1c1   : > { %1030 = vrot.lane.b32.xlu1 %v4133_v11, %s4453_s17 }
 0x1c3   : > { %1028 = vrot.lane.b32.xlu0 %v675_v13, %s3744_s15 }
 0x1c5   : > { %1201 = vrot.lane.b32.xlu1 %v4133_v11, %s4450_s11  ;;  %s4486_s11 = smov 72  }
 0x1c7   : > { %1199 = vrot.lane.b32.xlu0 %v675_v13, %s4451_s29  ;;  %s4479_s29 = sld [smem:[#allocation21_spill]] }
 0x22d   : > { %v692_v14 = vpop.permute.xlu0 %691 }
 0x22e   : > { %3004 = vmatpush3.xpose.msk.msra.mxu1 %vm693_vm2, %v692_v14 }
 0x22f   : > { %v858_v15 = vpop.permute.xlu1 %857  ;;  %3008 = vmatprep.subr.mxu1 %v3739_v1 }
 0x231   : > { %v860_v16 = vpop.permute.xlu0 %859  ;;  %3006 = vmatmul.mubr.msk.f32.vlgmr.msra.gmra.mrb[2].mxu1 %vm693_vm2, %v675_v13 }
 0x232   : > { %3014 = vmatpush3.xpose.msk.msra.mxu0 %vm693_vm2, %v860_v16  ;;  %3010 = vmatprep.mubr.msk.f32.mxu1 %vm3738_vm0, %v3739_v1 }
 0x233   : > { %v1031_v17 = vpop.permute.xlu1 %1030  ;;  %3023 = vmatprep.subr.mxu0 %v3739_v1 }
 0x235   : > { %3016 = vmatmul.mubr.msk.f32.vlgmr.msra.gmra.mrb[0].mxu0 %vm693_vm2, %v858_v15  ;;  %v1029_v18 = vpop.permute.xlu0 %1028 }
 0x236   : > { %3024 = vmatpush3.xpose.msk.msra.mxu0 %vm693_vm2, %v1031_v17  ;;  %3025 = vmatprep.mubr.msk.f32.mxu0 %vm3738_vm0, %v3739_v1 }
 0x237   : > { %3033 = vmatprep.subr.mxu0 %v3739_v1  ;;  %v1202_v19 = vpop.permute.xlu1 %1201 }
 0x239   : > { %3026 = vmatmul.mubr.msk.f32.vlgmr.msra.gmra.mrb[2].mxu0 %vm693_vm2, %v1029_v18  ;;  %v1200_v20 = vpop.permute.xlu0 %1199 }
 0x23a   : > { %3034 = vmatpush3.xpose.msk.msra.mxu0 %vm693_vm2, %v1202_v19  ;;  %3035 = vmatprep.mubr.msk.f32.mxu0 %vm3738_vm0, %v3739_v1  ;;  %v685_v19 = vld [vmem:[%s4436_s6] sm:$0xff] }
 0x23b   : > { %3179 = vmatprep.subr.bf16.mxu0 %v3737_v0 }
 0x23d   : > { %3036 = vmatmul.mubr.msk.f32.vlgmr.msra.gmra.mrb[4].mxu0 %vm693_vm2, %v1200_v20  ;;  %v686_v20 = vld [vmem:[%s4436_s6 + $0x8] sm:$0xff] }
 0x23e   : > { %3051 = vmatprep.mubr.msk.f32.mxu0 %vm3738_vm0, %v3739_v1  ;;  %v3180_v21 = vpack.c.bf16 %v686_v20, %v685_v19 }
 0x240   : > { %3181 = vmatpush3.bf16.msra.mxu0 %v3180_v21 }
 0x241   : > { %3182 = vmatprep.subr.bf16.mxu0 %v3737_v0 }
 0x304   : > { %v765_v24 = vpop.f32.mrb[2].mxu1 }
 0x305   : > { %v766_v25 = vadd.f32 %v765_v24, %v684_v23  ;;  %v3007_v26 = vpop.f32.mrb[3].mxu1 }
 0x307   : > { %v769_v27 = vsel %vm693_vm2, %v766_v25, -inf }
 0x308   : > { %v931_v28 = vpop.f32.mrb[0].mxu0  ;;  %770 = vmax.xlane.f32.xlu1 %v769_v27 }
 0x309   : > { %v932_v29 = vadd.f32 %v931_v28, %v684_v23  ;;  %v3017_v30 = vpop.f32.mrb[1].mxu0 }
 0x30b   : > { %v935_v31 = vsel %vm693_vm2, %v932_v29, -inf }
 0x30c   : > { %936 = vmax.xlane.f32.xlu0 %v935_v31  ;;  %v1102_v32 = vpop.f32.mrb[2].mxu0 }
 0x30d   : > { %v1103_v33 = vadd.f32 %v1102_v32, %v684_v23  ;;  %v3027_v34 = vpop.f32.mrb[3].mxu0 }
 0x30f   : > { %v1106_v35 = vsel %vm693_vm2, %v1103_v33, -inf }
 0x310   : > { %1107 = vmax.xlane.f32.xlu0 %v1106_v35  ;;  %v1273_v36 = vpop.f32.mrb[4].mxu0 }
 0x311   : > { %v1274_v37 = vadd.f32 %v1273_v36, %v684_v23  ;;  %v3037_v38 = vpop.f32.mrb[5].mxu0  ;;  %v688_v23 = vld [vmem:[%s4436_s6 + $0x18] sm:$0xff] }
 0x312   : > { %v3183_v24 = vpack.c.bf16 %v688_v23, %v687_v22 }
 0x313   : > { %v1277_v39 = vsel %vm693_vm2, %v1274_v37, -inf }
 0x314   : > { %1278 = vmax.xlane.f32.xlu1 %v1277_v39  ;;  %3184 = vmatpush3.bf16.msra.mxu0 %v3183_v24 }
 0x325   : > { %946 = vrot.lane.b32.xlu1 %v4133_v11, %s3747_s2  ;;  %s3751_s2 = smov 8  }
 0x395   : > { %v771_v40 = vpop.xlane.xlu1 %770 }
 0x396   : > { %v772_v41 = vsub.f32 %v766_v25, %v771_v40 }
 0x398   : > { %v773_v42 = vmul.f32 1.442695, %v772_v41 }
 0x399   : > { %v937_v43 = vpop.xlane.xlu0 %936 }
 0x39a   : > { %3412 = vpow2.f32 %v773_v42  ;;  %v938_v44 = vsub.f32 %v932_v29, %v937_v43 }
 0x39c   : > { %v939_v45 = vmul.f32 1.442695, %v938_v44  ;;  %v1558_v44 = vld [vmem:[#allocation9] sm:$0xff] }
 0x39d   : > { %v1108_v55 = vpop.xlane.xlu0 %1107 }
 0x39e   : > { %3414 = vpow2.f32 %v939_v45  ;;  %v1109_v56 = vsub.f32 %v1103_v33, %v1108_v55  ;;  %v2871_v33 = vld [vmem:[#allocation14 + $0x1] ss:$0 sm:$0xff]  ;;  %v1559_v45 = vld [vmem:[#allocation9 + $0x8] sm:$0xff]  ;;  %v1478_v55 = vld [vmem:[#allocation8 + $0x18] sm:$0xff] }
 0x3a0   : > { %v1110_v57 = vmul.f32 1.442695, %v1109_v56 }
 0x3a1   : > { %v1279_v46 = vpop.xlane.xlu1 %1278 }
 0x3a2   : > { %v1280_v47 = vsub.f32 %v1274_v37, %v1279_v46  ;;  %v3191_v46 = vpack.c.bf16 %v1559_v45, %v1558_v44 }
 0x3a4   : > { %v3413_v48 = vpop.eup %3412  ;;  %v1281_v49 = vmul.f32 1.442695, %v1280_v47  ;;  %3192 = vmatprep.subr.bf16.mxu0 %v3191_v46  ;;  %v1560_v47 = vld [vmem:[#allocation9 + $0x10] sm:$0xff] }
 0x3a5   : > { %v775_v50 = vsel %vm693_vm2, %v3413_v48, 0.0  ;;  %v947_v60 = vpop.permute.xlu1 %946 }
 0x3a6   : > { %3416 = vpow2.f32 %v1281_v49  ;;  %776 = vadd.xlane.f32.xlu0 %v775_v50 }
 0x3a7   : > { %3418 = vpow2.f32 %v1110_v57 }
 0x3a8   : > { %v3415_v51 = vpop.eup %3414 }
 0x3a9   : > { %v941_v52 = vsel %vm693_vm2, %v3415_v51, 0.0 }
 0x3aa   : > { %942 = vadd.xlane.f32.xlu1 %v941_v52  ;;  %v1476_v52 = vld [vmem:[#allocation8 + $0x8] sm:$0xff] }
 0x3b0   : > { %v3417_v53 = vpop.eup %3416 }
 0x3b1   : > { %v1283_v54 = vsel %vm693_vm2, %v3417_v53, 0.0  ;;  %v3419_v58 = vpop.eup %3418 }
 0x3b2   : > { %1284 = vadd.xlane.f32.xlu1 %v1283_v54  ;;  %v1112_v59 = vsel %vm693_vm2, %v3419_v58, 0.0  ;;  %v1477_v54 = vld [vmem:[#allocation8 + $0x10] sm:$0xff] }
 0x3b3   : > { %v3189_v56 = vpack.c.bf16 %v1478_v55, %v1477_v54 }
 0x3bc   : > { %780 = vrot.lane.b32.xlu0 %v4133_v11, %s3748_s18  ;;  %s3752_s18 = smov 16  }
 0x3c3   : > { %1117 = vrot.lane.b32.xlu1 %v4133_v11, %s3749_s20  ;;  %s582_s20 = scalar_lea.vmem %s4479_s29, %s2911_s24  ;;  %s4488_s24 = sshll.u32 %s4085_s1, 3 }
 0x3c4   : > { %v591_v50 = vld [vmem:[%s582_s20 + $0x8] sm:$0xff] }
 0x3db   : > { %1113 = vadd.xlane.f32.xlu0 %v1112_v59 }
 0x3f1   : > { %1288 = vrot.lane.b32.xlu0 %v4133_v11, %s3750_s4  ;;  %s2908_s4 = sshll.u32 %s3846_s14, 7  ;;  %s3754_s14 = smov [#allocation15]  }
 0x3f2   : > { %s3652_s29 = sshll.u32 %s3754_s14, 4  ;;  %s3653_s29 = int_to_ptr.vmem [resolvable:$false] %s3652_s29 }
 0x433   : > { %v777_v61 = vpop.xlane.xlu0 %776 }
 0x434   : > { %3420 = vrcp.f32 %v777_v61  ;;  %v2873_v61 = vld [vmem:[#allocation14 + $0x7] ss:$0 sm:$0xff] }
 0x437   : > { %v781_v62 = vpop.permute.xlu0 %780  ;;  %v943_v63 = vpop.xlane.xlu1 %942 }
 0x438   : > { %3422 = vrcp.f32 %v943_v63  ;;  %3009 = vmatpush3.msra.mxu1 %v781_v62  ;;  %v2874_v63 = vld [vmem:[#allocation14 + $0x8] ss:$0 sm:$0xff] }
 0x439   : > { %3018 = vmatprep.subr.mxu1 %v3739_v1 }
 0x43e   : > { %v3421_v2 = vpop.eup %3420 }
 0x43f   : > { %v779_v3 = vmul.f32 %v3421_v2, %v3413_v48  ;;  %v1285_v4 = vpop.xlane.xlu1 %1284  ;;  %v1561_v48 = vld [vmem:[#allocation9 + $0x18] sm:$0xff] }
 0x440   : > { %v3195_v49 = vpack.c.bf16 %v1561_v48, %v1560_v47 }
 0x441   : > { %3011 = vmatmul.mubr.msk.f32.vlgmr.msra.gmra.mrb[4].mxu1 %vm693_vm2, %v779_v3 }
 0x442   : > { %v3423_v5 = vpop.eup %3422  ;;  %3019 = vmatpush3.msra.mxu1 %v947_v60  ;;  %3020 = vmatprep.mubr.msk.f32.mxu1 %vm3738_vm0, %v3739_v1 }
 0x443   : > { %v945_v6 = vmul.f32 %v3423_v5, %v3415_v51  ;;  %v1118_v7 = vpop.permute.xlu1 %1117  ;;  %3028 = vmatprep.subr.mxu1 %v3739_v1  ;;  %v1475_v51 = vld [vmem:[#allocation8] sm:$0xff] }
 0x445   : > { %3021 = vmatmul.mubr.msk.f32.vlgmr.msra.gmra.mrb[6].mxu1 %vm693_vm2, %v945_v6 }
 0x446   : > { %3029 = vmatpush3.msra.mxu1 %v1118_v7  ;;  %3030 = vmatprep.mubr.msk.f32.mxu1 %vm3738_vm0, %v3739_v1 }
 0x447   : > { %3038 = vmatprep.subr.mxu1 %v3739_v1 }
 0x468   : > { %v1114_v9 = vpop.xlane.xlu0 %1113 }
 0x469   : > { %3424 = vrcp.f32 %v1114_v9 }
 0x46a   : > { %3426 = vrcp.f32 %v1285_v4  ;;  %v2877_v4 = vld [vmem:[#allocation14 + $0x3] ss:$0 sm:$0xff] }
 0x46c   : > { %v1289_v13 = vpop.permute.xlu0 %1288 }
 0x473   : > { %v3425_v10 = vpop.eup %3424 }
 0x474   : > { %v1116_v11 = vmul.f32 %v3425_v10, %v3419_v58  ;;  %v3427_v12 = vpop.eup %3426 }
 0x475   : > { %v1287_v14 = vmul.f32 %v3427_v12, %v3417_v53  ;;  %v3186_v53 = vpack.c.bf16 %v1476_v52, %v1475_v51 }
 0x476   : > { %3031 = vmatmul.mubr.msk.f32.vlgmr.msra.gmra.mrb[8].mxu1 %vm693_vm2, %v1116_v11 }
 0x477   : > { %3039 = vmatpush3.msra.mxu1 %v1289_v13  ;;  %3040 = vmatprep.mubr.msk.f32.mxu1 %vm3738_vm0, %v3739_v1 }
 0x478   : > { %3185 = vmatprep.subr.bf16.mxu1 %v3737_v0 }
 0x47a   : > { %3041 = vmatmul.mubr.msk.f32.vlgmr.msra.gmra.mrb[10].mxu1 %vm693_vm2, %v1287_v14  ;;  %v2875_v14 = vld [vmem:[#allocation14 + $0x2] ss:$0 sm:$0xff] }
 0x47b   : > { %3062 = vmatprep.mubr.msk.f32.mxu1 %vm3738_vm0, %v3739_v1  ;;  %3187 = vmatpush3.bf16.msra.mxu1 %v3186_v53 }
 0x47c   : > { %3188 = vmatprep.subr.bf16.mxu1 %v3737_v0 }
 0x47f   : > { %3190 = vmatpush3.bf16.msra.mxu1 %v3189_v56 }
 0x480   : > { %3199 = vmatprep.subr.bf16.mxu1 %v3737_v0 }
 0x514   : > { %v852_v15 = vpop.f32.mrb[4].mxu1 }
 0x515   : > { %856 = vst.msk [vmem:[#allocation2] sm:$0xff] %vm693_vm2, %v852_v15  ;;  %v3012_v16 = vpop.f32.mrb[5].mxu1 }
 0x518   : > { %v1018_v17 = vpop.f32.mrb[6].mxu1 }
 0x519   : > { %1023 = vrot.lane.b32.xlu1 %v1018_v17, %s3751_s2  ;;  %v3022_v18 = vpop.f32.mrb[7].mxu1 }
 0x549   : > { %v1189_v25 = vpop.f32.mrb[8].mxu1 }
 0x54a   : > { %1194 = vrot.lane.b32.xlu0 %v1189_v25, %s3752_s18  ;;  %v3032_v26 = vpop.f32.mrb[9].mxu1 }
 0x54d   : > { %v1360_v27 = vpop.f32.mrb[10].mxu1 }
 0x54e   : > { %1365 = vrot.lane.b32.xlu1 %v1360_v27, %s3753_s30  ;;  %v3042_v28 = vpop.f32.mrb[11].mxu1 }
 0x58b   : > { %v1024_v29 = vpop.permute.xlu1 %1023 }
 0x58c   : > { %1027 = vst.msk [vmem:[#allocation2] sm:$0xff] %vm1026_vm3, %v1024_v29 }
 0x5bc   : > { %v1195_v30 = vpop.permute.xlu0 %1194 }
 0x5bd   : > { %1198 = vst.msk [vmem:[#allocation2] sm:$0xff] %vm1197_vm4, %v1195_v30 }
 0x5c0   : > { %v1366_v31 = vpop.permute.xlu1 %1365 }
 0x5c1   : > { %1369 = vst.msk [vmem:[#allocation2] sm:$0xff] %vm1368_vm5, %v1366_v31 }
 0x5c8   : > { %v1370_v32 = vld [vmem:[#allocation2] sm:$0xff] }
 0x5c9   : > { %3052 = vmatmul.mubr.msk.f32.vlgmr.msra.gmra.mrb[6].mxu0 %vm601_vm1, %v1370_v32 }
 0x5ca   : > { %3194 = vmatpush3.bf16.msra.mxu0 %v3191_v46 }
 0x5cb   : > { %3196 = vmatprep.subr.bf16.mxu0 %v3195_v49 }
 0x5ce   : > { %3198 = vmatpush3.bf16.msra.mxu0 %v3195_v49 }
 0x5cf   : > { %3203 = vmatprep.subr.bf16.mxu0 %v3737_v0 }
 0x69c   : > { %v1444_v34 = vpop.f32.mrb[6].mxu0 }
 0x69d   : > { %v1445_v35 = vadd.f32 %v2871_v33, %v1444_v34  ;;  %v3053_v36 = vpop.f32.mrb[7].mxu0 }
 0x69f   : > { %v1448_v37 = vadd.f32 %v1445_v35, %v4126_v8  ;;  %v590_v8 = vld [vmem:[%s582_s20] sm:$0xff]  ;;  %s3654_s20 = scalar_lea.vmem %s3653_s29, 256 }
 0x6a0   : > { %3073 = vmatprep.mubr.msk.f32.mxu0 %vm601_vm1, %v590_v8 }
 0x6a1   : > { %v1451_v38 = vsel %vm601_vm1, %v1448_v37, 0.0  ;;  %3074 = vmatmul.mubr.msk.f32.vlgmr.msra.gmra.mrb[8].mxu0 %vm601_vm1, %v591_v50 }
 0x6a2   : > { %1452 = vadd.xlane.f32.xlu0 %v1451_v38  ;;  %3087 = vmatprep.mubr.msk.f32.mxu0 %vm3738_vm0, %v3739_v1 }
 0x72f   : > { %v1453_v39 = vpop.xlane.xlu0 %1452 }
 0x730   : > { %v1455_v40 = vmul.f32 0.03125, %v1453_v39 }
 0x732   : > { %v1456_v41 = vsub.f32 %v1448_v37, %v1455_v40 }
 0x734   : > { %v1457_v42 = vmul.f32 %v1456_v41, %v1456_v41 }
 0x736   : > { %v1458_v43 = vsel %vm601_vm1, %v1457_v42, 0.0 }
 0x737   : > { %1459 = vadd.xlane.f32.xlu1 %v1458_v43 }
 0x774   : > { %v3075_v5 = vpop.f32.mrb[8].mxu0 }
 0x775   : > { %v1645_v6 = vadd.f32 %v3075_v5, %v2877_v4  ;;  %v1639_v7 = vpop.f32.mrb[9].mxu0 }
 0x776   : > { %v1640_v9 = vadd.f32 %v2877_v4, %v1639_v7 }
 0x778   : > { %v4250_v11 = vpack.i.bf16 %v1645_v6, %v1640_v9  ;;  %v3200_v12 = vpack.c.bf16 %v1645_v6, %v1640_v9 }
 0x77a   : > { %3378 = vrot.lane.b32.xlu0 %v4250_v11, %s3741_s21 }
 0x7c4   : > { %v1460_v57 = vpop.xlane.xlu1 %1459 }
 0x7c5   : > { %v1461_v58 = vmul.f32 0.03125, %v1460_v57 }
 0x7c7   : > { %v1462_v59 = vadd.f32 1e-05, %v1461_v58 }
 0x7c9   : > { %3428 = vrsqrt.f32 %v1462_v59 }
 0x7d3   : > { %v3429_v60 = vpop.eup %3428 }
 0x7d4   : > { %v1464_v62 = vmul.f32 %v3429_v60, %v1456_v41 }
 0x7d6   : > { %v1469_v2 = vmul.f32 %v2873_v61, %v1464_v62 }
 0x7d8   : > { %v4238_v3 = vadd.f32 %v2874_v63, %v1469_v2 }
 0x7da   : > { %3063 = vmatmul.mubr.msk.f32.vlgmr.msra.gmra.mrb[12].mxu1 %vm601_vm1, %v4238_v3 }
 0x7db   : > { %3080 = vmatprep.mubr.msk.f32.mxu1 %vm3738_vm0, %v3739_v1  ;;  %3202 = vmatpush3.bf16.xpose.msk.msra.mxu1 %vm4246_vm6, %v3200_v12 }
 0x7dc   : > { %3206 = vmatprep.subr.bf16.mxu1 %v3737_v0 }
 0x7ec   : > { %v3379_v13 = vpop.permute.xlu0 %3378 }
 0x7ed   : > { %v3381_v15 = vunpack.i.h.bf16 %v3379_v13  ;;  %v3380_v16 = vunpack.i.l.bf16 %v3379_v13 }
 0x7ef   : > { %v3207_v20 = vpack.c.bf16 %v3381_v15, %v3380_v16 }
 0x8ad   : > { %v1553_v17 = vpop.f32.mrb[12].mxu1 }
 0x8ae   : > { %v1554_v18 = vadd.f32 %v2875_v14, %v1553_v17  ;;  %v3064_v19 = vpop.f32.mrb[13].mxu1 }
 0x8b0   : > { %v4257_v21 = vmul.f32 0.35355338, %v1554_v18 }
 0x8b2   : > { %1831 = vrot.lane.b32.xlu1 %v4257_v21, %s3741_s21  ;;  %3081 = vmatmul.mubr.msk.f32.vlgmr.msra.gmra.mrb[14].mxu1 %vm693_vm2, %v4257_v21  ;;  %s4482_s21 = sld [smem:[#allocation23_spill]] }
 0x8b3   : > { %3209 = vmatpush3.bf16.xpose.msk.msra.mxu1 %vm4246_vm6, %v3207_v20  ;;  %3094 = vmatprep.mubr.msk.f32.mxu1 %vm3738_vm0, %v3739_v1 }
 0x8b4   : > { %3217 = vmatprep.subr.bf16.mxu1 %v3737_v0 }
 0x8b8   : > { %s588_s17 = scalar_lea.vmem %s4482_s21, %s4169_s13  ;;  %s4485_s13 = smov 104  }
 0x8b9   : > { %v4275_v23 = vld [vmem:[%s588_s17] ss:$0 sm:$0xff]  ;;  %s577_s21 = scalar_lea.vmem [#allocation15], %s4488_s24 }
 0x8ba   : > { %s2677_s17 = sshll.u32 %s577_s21, 4  ;;  %s4387_s17 = int_to_ptr.vmem [resolvable:$true] %s2677_s17 }
 0x8bb   : > { %p3655_p1 = scmp.lt.s32.totalorder %s4387_s17, %s3653_s29 }
 0x924   : > { %v1832_v22 = vpop.permute.xlu1 %1831 }
 0x925   : > { %3095 = vmatmul.mubr.msk.f32.vlgmr.msra.gmra.mrb[16].mxu1 %vm693_vm2, %v1832_v22 }
 0x926   : > { %3115 = vmatprep.mubr.msk.f32.mxu1 %vm3738_vm0, %v3739_v1 }
 0x985   : > { %v1735_v24 = vpop.f32.mrb[14].mxu1 }
 0x986   : > { %v1736_v25 = vadd.f32 %v4275_v23, %v1735_v24  ;;  %v3082_v26 = vpop.f32.mrb[15].mxu1 }
 0x988   : > { %v1740_v27 = vsel %vm1739_vm7, %v1736_v25, -inf }
 0x989   : > { %1741 = vmax.xlane.f32.xlu0 %v1740_v27 }
 0x9f8   : > { %v1909_v28 = vpop.f32.mrb[16].mxu1 }
 0x9f9   : > { %v1910_v29 = vadd.f32 %v4275_v23, %v1909_v28  ;;  %v3096_v30 = vpop.f32.mrb[17].mxu1 }
 0x9fb   : > { %v1913_v31 = vsel %vm1739_vm7, %v1910_v29, -inf }
 0x9fc   : > { %1914 = vmax.xlane.f32.xlu1 %v1913_v31 }
 0xa0d   : > { %3383 = vrot.lane.b32.xlu1 %v4250_v11, %s3740_s19  ;;  %s4483_s19 = smov 88  }
 0xa11   : > { %3393 = vrot.lane.b32.xlu1 %v4250_v11, %s3744_s15 }
 0xa15   : > { %2008 = vrot.lane.b32.xlu1 %v4257_v21, %s3744_s15  ;;  %s4484_s15 = smov 80  }
 0xa16   : > { %v1742_v32 = vpop.xlane.xlu0 %1741 }
 0xa17   : > { %v1743_v33 = vsub.f32 %v1736_v25, %v1742_v32 }
 0xa19   : > { %v1744_v34 = vmul.f32 1.442695, %v1743_v33 }
 0xa1b   : > { %3430 = vpow2.f32 %v1744_v34 }
 0xa25   : > { %v3431_v35 = vpop.eup %3430 }
 0xa26   : > { %v1746_v36 = vsel %vm1739_vm7, %v3431_v35, 0.0 }
 0xa27   : > { %1747 = vadd.xlane.f32.xlu0 %v1746_v36 }
 0xa89   : > { %v1915_v37 = vpop.xlane.xlu1 %1914 }
 0xa8a   : > { %v1916_v38 = vsub.f32 %v1910_v29, %v1915_v37 }
 0xa8c   : > { %v1917_v39 = vmul.f32 1.442695, %v1916_v38 }
 0xa8d   : > { %v3384_v40 = vpop.permute.xlu1 %3383 }
 0xa8e   : > { %3432 = vpow2.f32 %v1917_v39  ;;  %v3386_v41 = vunpack.i.h.bf16 %v3384_v40  ;;  %v3385_v42 = vunpack.i.l.bf16 %v3384_v40 }
 0xa90   : > { %v3204_v43 = vpack.c.bf16 %v3386_v41, %v3385_v42 }
 0xa91   : > { %v3394_v53 = vpop.permute.xlu1 %3393 }
 0xa92   : > { %3205 = vmatpush3.bf16.msra.mxu0 %v3204_v43  ;;  %v3396_v55 = vunpack.i.h.bf16 %v3394_v53  ;;  %v3395_v56 = vunpack.i.l.bf16 %v3394_v53 }
 0xa93   : > { %3210 = vmatprep.subr.bf16.mxu0 %v3737_v0 }
 0xa94   : > { %v3214_v58 = vpack.c.bf16 %v3396_v55, %v3395_v56 }
 0xa95   : > { %v2009_v59 = vpop.permute.xlu1 %2008 }
 0xa98   : > { %v3433_v44 = vpop.eup %3432 }
 0xa99   : > { %v1919_v45 = vsel %vm1739_vm7, %v3433_v44, 0.0 }
 0xa9a   : > { %1920 = vadd.xlane.f32.xlu0 %v1919_v45 }
 0xab0   : > { %3388 = vrot.lane.b32.xlu0 %v4250_v11, %s4483_s19 }
 0xab4   : > { %v1748_v46 = vpop.xlane.xlu0 %1747 }
 0xab5   : > { %3434 = vrcp.f32 %v1748_v46  ;;  %v1649_v46 = vld [vmem:[#allocation11] sm:$0xff] }
 0xabf   : > { %v3435_v47 = vpop.eup %3434 }
 0xac0   : > { %v1750_v48 = vmul.f32 %v3435_v47, %v3431_v35  ;;  %v1650_v47 = vld [vmem:[#allocation11 + $0x8] sm:$0xff] }
 0xac2   : > { %3088 = vmatmul.mubr.msk.f32.vlgmr.msra.gmra.mrb[10].mxu0 %vm1739_vm7, %v1750_v48  ;;  %v3228_v48 = vpack.c.bf16 %v1650_v47, %v1649_v46 }
 0xac3   : > { %3101 = vmatprep.mubr.msk.f32.mxu0 %vm3738_vm0, %v3739_v1 }
 0xb27   : > { %v1921_v49 = vpop.xlane.xlu0 %1920 }
 0xb28   : > { %3436 = vrcp.f32 %v1921_v49  ;;  %v1652_v49 = vld [vmem:[#allocation11 + $0x18] sm:$0xff] }
 0xb2b   : > { %v3389_v8 = vpop.permute.xlu0 %3388 }
 0xb2c   : > { %v3391_v50 = vunpack.i.h.bf16 %v3389_v8  ;;  %v3390_v51 = vunpack.i.l.bf16 %v3389_v8 }
 0xb2e   : > { %v3211_v52 = vpack.c.bf16 %v3391_v50, %v3390_v51 }
 0xb30   : > { %3212 = vmatpush3.bf16.msra.mxu0 %v3211_v52 }
 0xb31   : > { %3213 = vmatprep.subr.bf16.mxu0 %v3737_v0 }
 0xb32   : > { %v3437_v54 = vpop.eup %3436 }
 0xb33   : > { %v1923_v57 = vmul.f32 %v3437_v54, %v3433_v44  ;;  %v2897_v54 = vld [vmem:[#allocation14 + $0x4] ss:$0 sm:$0xff] }
 0xb35   : > { %3102 = vmatmul.mubr.msk.f32.vlgmr.msra.gmra.mrb[12].mxu0 %vm1739_vm7, %v1923_v57 }
 0xb36   : > { %3108 = vmatprep.mubr.msk.f32.mxu0 %vm3738_vm0, %v3739_v1 }
 0xb39   : > { %3216 = vmatpush3.bf16.xpose.msk.msra.mxu0 %vm4246_vm6, %v3214_v58 }
 0xb3a   : > { %3224 = vmatprep.subr.bf16.mxu0 %v3737_v0 }
 0xb40   : > { %3109 = vmatmul.mubr.msk.f32.vlgmr.msra.gmra.mrb[14].mxu0 %vm693_vm2, %v2009_v59 }
 0xb41   : > { %3129 = vmatprep.mubr.msk.f32.mxu0 %vm3738_vm0, %v3739_v1 }
 0xb95   : > { %v1826_v60 = vpop.f32.mrb[10].mxu0 }
 0xb96   : > { %1830 = vst.msk [vmem:[#allocation2] sm:$0xff] %vm693_vm2, %v1826_v60  ;;  %v3089_v61 = vpop.f32.mrb[11].mxu0 }
 0xc08   : > { %v1999_v62 = vpop.f32.mrb[12].mxu0 }
 0xc09   : > { %v3103_v63 = vpop.f32.mrb[13].mxu0 }
 0xc13   : > { %v2086_v2 = vpop.f32.mrb[14].mxu0 }
 0xc14   : > { %v2087_v4 = vadd.f32 %v4275_v23, %v2086_v2  ;;  %v3110_v5 = vpop.f32.mrb[15].mxu0 }
 0xc15   : > { %v2467_v5 = vld [vmem:[#allocation12 + $0x8] sm:$0xff] }
 0xc16   : > { %v2090_v6 = vsel %vm1739_vm7, %v2087_v4, -inf }
 0xc17   : > { %2091 = vmax.xlane.f32.xlu0 %v2090_v6 }
 0xc2d   : > { %3398 = vrot.lane.b32.xlu0 %v4250_v11, %s4484_s15 }
 0xc31   : > { %2185 = vrot.lane.b32.xlu0 %v4257_v21, %s4485_s13 }
 0xca4   : > { %v2092_v7 = vpop.xlane.xlu0 %2091 }
 0xca5   : > { %v2093_v9 = vsub.f32 %v2087_v4, %v2092_v7  ;;  %v2466_v4 = vld [vmem:[#allocation12] sm:$0xff]  ;;  %v2469_v7 = vld [vmem:[#allocation12 + $0x18] sm:$0xff] }
 0xca6   : > { %v3234_v6 = vpack.c.bf16 %v2467_v5, %v2466_v4 }
 0xca7   : > { %v2094_v12 = vmul.f32 1.442695, %v2093_v9 }
 0xca8   : > { %v3399_v13 = vpop.permute.xlu0 %3398 }
 0xca9   : > { %3438 = vpow2.f32 %v2094_v12  ;;  %v3401_v14 = vunpack.i.h.bf16 %v3399_v13  ;;  %v3400_v15 = vunpack.i.l.bf16 %v3399_v13 }
 0xcab   : > { %v3218_v16 = vpack.c.bf16 %v3401_v14, %v3400_v15 }
 0xcac   : > { %v2186_v27 = vpop.permute.xlu0 %2185 }
 0xcad   : > { %3219 = vmatpush3.bf16.msra.mxu1 %v3218_v16 }
 0xcae   : > { %3220 = vmatprep.subr.bf16.mxu1 %v3737_v0 }
 0xcb3   : > { %v3439_v17 = vpop.eup %3438 }
 0xcb4   : > { %v2096_v18 = vsel %vm1739_vm7, %v3439_v17, 0.0 }
 0xcb5   : > { %2097 = vadd.xlane.f32.xlu1 %v2096_v18 }
 0xcc6   : > { %3403 = vrot.lane.b32.xlu1 %v4250_v11, %s4485_s13  ;;  %s4489_s13 = sld [smem:[#allocation26_spill]] }
 0xd42   : > { %v2098_v19 = vpop.xlane.xlu1 %2097 }
 0xd43   : > { %3440 = vrcp.f32 %v2098_v19 }
 0xd46   : > { %v3404_v20 = vpop.permute.xlu1 %3403 }
 0xd47   : > { %v3406_v21 = vunpack.i.h.bf16 %v3404_v20  ;;  %v3405_v22 = vunpack.i.l.bf16 %v3404_v20 }
 0xd49   : > { %v3221_v26 = vpack.c.bf16 %v3406_v21, %v3405_v22 }
 0xd4d   : > { %v3441_v24 = vpop.eup %3440 }
 0xd4e   : > { %v2100_v25 = vmul.f32 %v3441_v24, %v3439_v17 }
 0xd50   : > { %3116 = vmatmul.mubr.msk.f32.vlgmr.msra.gmra.mrb[18].mxu1 %vm1739_vm7, %v2100_v25  ;;  %v2899_v25 = vld [vmem:[#allocation14 + $0x9] ss:$0 sm:$0xff] }
 0xd51   : > { %3223 = vmatpush3.bf16.xpose.msk.msra.mxu1 %vm4246_vm6, %v3221_v26  ;;  %3122 = vmatprep.mubr.msk.f32.mxu1 %vm3738_vm0, %v3739_v1 }
 0xd52   : > { %3233 = vmatprep.subr.bf16.mxu1 %v3737_v0 }
 0xd58   : > { %3123 = vmatmul.mubr.msk.f32.vlgmr.msra.gmra.mrb[20].mxu1 %vm693_vm2, %v2186_v27  ;;  %v2900_v27 = vld [vmem:[#allocation14 + $0xa] ss:$0 sm:$0xff] }
 0xd59   : > { %3151 = vmatprep.mubr.msk.f32.mxu1 %vm3738_vm0, %v3739_v1  ;;  %3235 = vmatpush3.bf16.msra.mxu1 %v3234_v6 }
 0xd5a   : > { %3236 = vmatprep.subr.bf16.mxu1 %v3737_v0 }
 0xe23   : > { %v2176_v28 = vpop.f32.mrb[18].mxu1 }
 0xe24   : > { %v3117_v29 = vpop.f32.mrb[19].mxu1 }
 0xe2b   : > { %v2263_v30 = vpop.f32.mrb[20].mxu1 }
 0xe2c   : > { %v2264_v31 = vadd.f32 %v4275_v23, %v2263_v30  ;;  %v3124_v32 = vpop.f32.mrb[21].mxu1 }
 0xe2d   : > { %v2901_v32 = vld [vmem:[#allocation14 + $0x5] ss:$0 sm:$0xff] }
 0xe2e   : > { %v2267_v10 = vsel %vm1739_vm7, %v2264_v31, -inf }
 0xe2f   : > { %2268 = vmax.xlane.f32.xlu1 %v2267_v10 }
 0xe40   : > { %2004 = vrot.lane.b32.xlu1 %v1999_v62, %s3751_s2  ;;  %s2664_s2 = scalar_lea.sflag [#allocation5], %s4085_s1 }
 0xe44   : > { %2181 = vrot.lane.b32.xlu1 %v2176_v28, %s3752_s18  ;;  %s3648_s18 = scalar_lea.vmem %s4387_s17, 128 }
 0xe45   : > { %p3649_p12 = scmp.ne.s32.totalorder %s4387_s17, %s3648_s18  ;;  %p3656_p3 = scmp.lt.s32.totalorder %s3654_s20, %s3648_s18 }
 0xe47   : > { %p3650_p7 = pnand %p3649_p12, %p4490_p5  ;;  %p3657_p9 = por %p3656_p3, %p3655_p1 }
 0xe49   : > { %p3651_p4 = pneg %p3650_p7 }
 0xe4b   : > { %p3658_p13 = pnand %p3657_p9, %p3651_p4 }
 0xebc   : > { %v2269_v33 = vpop.xlane.xlu1 %2268 }
 0xebd   : > { %v2270_v34 = vsub.f32 %v2264_v31, %v2269_v33 }
 0xebf   : > { %v2271_v35 = vmul.f32 1.442695, %v2270_v34 }
 0xec0   : > { %v2005_v36 = vpop.permute.xlu1 %2004 }
 0xec1   : > { %3442 = vpow2.f32 %v2271_v35  ;;  %2007 = vst.msk [vmem:[#allocation2] sm:$0xff] %vm1026_vm3, %v2005_v36  ;;  %v2903_v36 = vld [vmem:[#allocation14 + $0x6] ss:$0 sm:$0xff] }
 0xec4   : > { %v2182_v37 = vpop.permute.xlu1 %2181 }
 0xec5   : > { %2184 = vst.msk [vmem:[#allocation2] sm:$0xff] %vm1197_vm4, %v2182_v37 }
 0xecb   : > { %v3443_v38 = vpop.eup %3442 }
 0xecc   : > { %v2273_v23 = vsel %vm1739_vm7, %v3443_v38, 0.0 }
 0xecd   : > { %2274 = vadd.xlane.f32.xlu0 %v2273_v23 }
 0xee3   : > { %3408 = vrot.lane.b32.xlu0 %v4250_v11, %s4486_s11  ;;  %v1651_v11 = vld [vmem:[#allocation11 + $0x10] sm:$0xff]  ;;  %s4385_s11 = scalar_lea.hbm %s4489_s13, %s2908_s4 }
 0xee4   : > { %v3231_v8 = vpack.c.bf16 %v1652_v49, %v1651_v11  ;;  %v2905_v49 = vld [vmem:[#allocation14 + $0xb] ss:$0 sm:$0xff] }
 0xf5a   : > { %v2275_v39 = vpop.xlane.xlu0 %2274 }
 0xf5b   : > { %3444 = vrcp.f32 %v2275_v39 }
 0xf5e   : > { %v3409_v40 = vpop.permute.xlu0 %3408 }
 0xf5f   : > { %v3411_v41 = vunpack.i.h.bf16 %v3409_v40  ;;  %v3410_v42 = vunpack.i.l.bf16 %v3409_v40 }
 0xf61   : > { %v3225_v43 = vpack.c.bf16 %v3411_v41, %v3410_v42 }
 0xf63   : > { %3226 = vmatpush3.bf16.msra.mxu0 %v3225_v43 }
 0xf64   : > { %3227 = vmatprep.subr.bf16.mxu0 %v3737_v0 }
 0xf65   : > { %v3445_v44 = vpop.eup %3444 }
 0xf66   : > { %v2277_v45 = vmul.f32 %v3445_v44, %v3443_v38 }
 0xf68   : > { %3130 = vmatmul.mubr.msk.f32.vlgmr.msra.gmra.mrb[16].mxu0 %vm1739_vm7, %v2277_v45 }
 0xf69   : > { %3140 = vmatprep.mubr.msk.f32.mxu0 %vm3738_vm0, %v3739_v1  ;;  %3229 = vmatpush3.bf16.msra.mxu0 %v3228_v48 }
 0xf6a   : > { %3230 = vmatprep.subr.bf16.mxu0 %v3737_v0 }
 0xf6d   : > { %3232 = vmatpush3.bf16.msra.mxu0 %v3231_v8 }
 0xf6e   : > { %3239 = vmatprep.subr.bf16.mxu0 %v3737_v0 }
0x103b   : > { %v2353_v50 = vpop.f32.mrb[16].mxu0 }
0x103c   : > { %2358 = vrot.lane.b32.xlu0 %v2353_v50, %s3753_s30  ;;  %v3131_v51 = vpop.f32.mrb[17].mxu0  ;;  %s4487_s30 = sld [smem:[#allocation25_spill]]  ;;  %v2906_v50 = vld [vmem:[#allocation14 + $0xc] ss:$0 sm:$0xff] }
0x1042   : > { %v2550_v12 = vld [vmem:[%s4487_s30 + $0x8] sm:$0xff]  ;;  %v2551_v13 = vld [vmem:[%s4487_s30 + $0x10] sm:$0xff]  ;;  %v2552_v15 = vld [vmem:[%s4487_s30 + $0x18] sm:$0xff] }
0x1043   : > { %v3243_v16 = vpack.c.bf16 %v2552_v15, %v2551_v13  ;;  %v2553_v17 = vld [vmem:[%s4487_s30 + $0x20] sm:$0xff]  ;;  %v2554_v18 = vld [vmem:[%s4487_s30 + $0x28] sm:$0xff]  ;;  %v2555_v30 = vld [vmem:[%s4487_s30 + $0x30] sm:$0xff] }
0x1044   : > { %v3246_v19 = vpack.c.bf16 %v2554_v18, %v2553_v17 }
0x10ae   : > { %v2359_v52 = vpop.permute.xlu0 %2358 }
0x10af   : > { %2361 = vst.msk [vmem:[#allocation2] sm:$0xff] %vm1368_vm5, %v2359_v52 }
0x10b6   : > { %v2362_v53 = vld [vmem:[#allocation2] sm:$0xff] }
0x10b7   : > { %3141 = vmatmul.mubr.msk.f32.vlgmr.msra.gmra.mrb[18].mxu0 %vm601_vm1, %v2362_v53 }
0x10b8   : > { %3170 = vmatprep.mubr.msk.f32.mxu0 %vm3738_vm0, %v3739_v1  ;;  %v2468_v1 = vld [vmem:[#allocation12 + $0x10] sm:$0xff] }
0x10b9   : > { %v3237_v9 = vpack.c.bf16 %v2469_v7, %v2468_v1 }
0x10bb   : > { %3238 = vmatpush3.bf16.msra.mxu1 %v3237_v9 }
0x118a   : > { %v2436_v55 = vpop.f32.mrb[18].mxu0 }
0x118b   : > { %v2437_v56 = vadd.f32 %v2897_v54, %v2436_v55  ;;  %v3142_v57 = vpop.f32.mrb[19].mxu0 }
0x118d   : > { %v2440_v58 = vadd.f32 %v2437_v56, %v4238_v3  ;;  %v2549_v3 = vld [vmem:[%s4487_s30] sm:$0xff] }
0x118e   : > { %v3240_v14 = vpack.c.bf16 %v2550_v12, %v2549_v3 }
0x118f   : > { %v2443_v59 = vsel %vm601_vm1, %v2440_v58, 0.0 }
0x1190   : > { %2444 = vadd.xlane.f32.xlu1 %v2443_v59  ;;  %3241 = vmatpush3.bf16.msra.mxu0 %v3240_v14 }
0x1191   : > { %3242 = vmatprep.subr.bf16.mxu0 %v3737_v0 }
0x1194   : > { %3244 = vmatpush3.bf16.msra.mxu0 %v3243_v16 }
0x1195   : > { %3245 = vmatprep.subr.bf16.mxu0 %v3737_v0 }
0x1198   : > { %3247 = vmatpush3.bf16.msra.mxu0 %v3246_v19 }
0x1199   : > { %3248 = vmatprep.subr.bf16.mxu0 %v3737_v0  ;;  %v2556_v0 = vld [vmem:[%s4487_s30 + $0x38] sm:$0xff] }
0x119a   : > { %v3249_v31 = vpack.c.bf16 %v2556_v0, %v2555_v30 }
0x119c   : > { %3250 = vmatpush3.bf16.msra.mxu0 %v3249_v31 }
0x121d   : > { %v2445_v60 = vpop.xlane.xlu1 %2444 }
0x121e   : > { %v2446_v61 = vmul.f32 0.03125, %v2445_v60 }
0x1220   : > { %v2447_v62 = vsub.f32 %v2440_v58, %v2446_v61 }
0x1222   : > { %v2448_v63 = vmul.f32 %v2447_v62, %v2447_v62 }
0x1224   : > { %v2449_v2 = vsel %vm601_vm1, %v2448_v63, 0.0 }
0x1225   : > { %2450 = vadd.xlane.f32.xlu0 %v2449_v2 }
0x12b2   : > { %v2451_v20 = vpop.xlane.xlu0 %2450 }
0x12b3   : > { %v2452_v21 = vmul.f32 0.03125, %v2451_v20 }
0x12b5   : > { %v2453_v22 = vadd.f32 1e-05, %v2452_v21 }
0x12b7   : > { %3446 = vrsqrt.f32 %v2453_v22 }
0x12c1   : > { %v3447_v24 = vpop.eup %3446 }
0x12c2   : > { %v2455_v26 = vmul.f32 %v3447_v24, %v2447_v62 }
0x12c4   : > { %v2460_v28 = vmul.f32 %v2899_v25, %v2455_v26 }
0x12c6   : > { %v2465_v29 = vadd.f32 %v2900_v27, %v2460_v28 }
0x12c8   : > { %3152 = vmatmul.mubr.msk.f32.vlgmr.msra.gmra.mrb[22].mxu1 %vm601_vm1, %v2465_v29 }
0x139b   : > { %v2544_v10 = vpop.f32.mrb[22].mxu1 }
0x139c   : > { %v2545_v33 = vadd.f32 %v2901_v32, %v2544_v10  ;;  %v3153_v34 = vpop.f32.mrb[23].mxu1 }
0x139e   : > { %v2548_v35 = vmax.f32 %v2545_v33, 0.0 }
0x13a0   : > { %3171 = vmatmul.mubr.msk.f32.vlgmr.msra.gmra.mrb[20].mxu0 %vm2562_vm8, %v2548_v35 }
0x1473   : > { %v2632_v37 = vpop.f32.mrb[20].mxu0 }
0x1474   : > { %v2633_v38 = vadd.f32 %v2903_v36, %v2632_v37  ;;  %v3172_v23 = vpop.f32.mrb[21].mxu0 }
0x1476   : > { %v2636_v39 = vadd.f32 %v2633_v38, %v2465_v29 }
0x1478   : > { %v2639_v40 = vsel %vm601_vm1, %v2636_v39, 0.0 }
0x1479   : > { %2640 = vadd.xlane.f32.xlu0 %v2639_v40 }
0x1506   : > { %v2641_v41 = vpop.xlane.xlu0 %2640 }
0x1507   : > { %v2642_v42 = vmul.f32 0.03125, %v2641_v41 }
0x1509   : > { %v2643_v43 = vsub.f32 %v2636_v39, %v2642_v42 }
0x150b   : > { %v2644_v44 = vmul.f32 %v2643_v43, %v2643_v43 }
0x150d   : > { %v2645_v45 = vsel %vm601_vm1, %v2644_v44, 0.0 }
0x150e   : > { %2646 = vadd.xlane.f32.xlu1 %v2645_v45 }
0x159b   : > { %v2647_v46 = vpop.xlane.xlu1 %2646 }
0x159c   : > { %v2648_v47 = vmul.f32 0.03125, %v2647_v46 }
0x159e   : > { %v2649_v48 = vadd.f32 1e-05, %v2648_v47 }
0x15a0   : > { %3448 = vrsqrt.f32 %v2649_v48 }
0x15aa   : > { %v3449_v11 = vpop.eup %3448 }
0x15ab   : > { %v2651_v8 = vmul.f32 %v3449_v11, %v2643_v43 }
0x15ad   : > { %v2656_v51 = vmul.f32 %v2905_v49, %v2651_v8 }
0x15af   : > { %v2661_v52 = vadd.f32 %v2906_v50, %v2656_v51 }
0x15b1   : > { %2662 = vst.msk [vmem:[%s577_s21] sm:$0xff] %vm601_vm1, %v2661_v52 }
0x15b2   : > { %3661 = shalt.err (!%p3658_p13)
}
0x15b3   : > { %s3662_s1 = scalar_lea.hbm %s4385_s11, 128  ;;  %s3666_s21 = scalar_lea.hbm %s4489_s13, 256 }
0x15b4   : > { %p3663_p0 = scmp.ne.s32.totalorder %s4385_s11, %s3662_s1  ;;  %p3667_p10 = scmp.lt.u32.totalorder %s4385_s11, %s4489_s13 }
0x15b5   : > { %p3668_p11 = scmp.lt.u32.totalorder %s3666_s21, %s3662_s1  ;;  %p3670_p12 = scmp.lt.u32.totalorder %s3662_s1, %s4385_s11 }
0x15b6   : > { %p3664_p2 = pnand %p3663_p0, %p4490_p5 }
0x15b7   : > { %p3669_p6 = por %p3668_p11, %p3667_p10 }
0x15b8   : > { %p3665_p8 = pneg %p3664_p2 }
0x15b9   : > { %p3671_p7 = por %p3670_p12, %p3669_p6 }
0x15bb   : > { %p3672_p4 = pnand %p3671_p7, %p3665_p8 }
0x15bd   : > { %3675 = shalt.err (!%p3672_p4)
}
0x15be   : > { %3277 = dma.vmem_to_hbm [thread:$0]  (%p4490_p5), %s4387_s17, 128, %s4385_s11, %s2664_s2  }
0x15bf PF: > { %s2689_s18 = sand.u32 1, %s3714_s25   ;;  %p4491_p1 = scmp.ne.s32.totalorder %s4470_s23, 0 }
0x15c0   : > { %p4492_p3 = scmp.ge.s32.totalorder %s3726_s28, 2  ;;  %s2690_s14 = scalar_lea.sflag [#allocation5], %s2689_s18 }
0x15c2   : > { %p3303_p9 = pnand %p4492_p3, %p4491_p1 }
0x15c4   : > { %3709 = dma.done.wait (!%p3303_p9), %s2690_s14, 128  }
0x15c5   : > { %3711 = vsyncadd (!%p3303_p9), %s2690_s14, 4294967168  ;;  %p29_p13 = scmp.ge.s32.totalorder %s4009_s16, 4   ;;  %s4493_s25 = smov %s3718_s26 }
0x15c6   : > { %s4494_s26 = smov %s3722_s27  ;;  %s4495_s27 = smov %s4020_s22 }
0x15c7   : > { %s4496_s28 = smov %s4009_s16  ;;  %31 = sbr.rel (!%p29_p13) target bundleno = 15 (0xf), region = 150 }
0x15ce   :  { %2695 = vsyncpa [#allocation4], 1 }
0x15cf   :  { %2697 = vsyncpa [#allocation4 + $0x1], 1 }
0x15d0   :  { %2698 = vsyncpa [#allocation7], 1 }
0x15d1   :  { %2699 = vsyncpa [#allocation10], 1 }
0x15d2   :  { %2700 = vsyncpa [#allocation13], 1 }
0x15d3   :  { %2701 = vsyncpa [#allocation5], 1 }
0x15d4   :  { %2703 = vsyncpa [#allocation5 + $0x1], 1 }

</bundles_post_ra>
